<compile_context>
chip_gen: v7x
topology: tpu7x:2x2x1
jax: 0.10.0
libtpu: 0.0.40
codegen_flags: <defaults>
</compile_context>

<pallas_src>
import math

import numpy as np
import jax
import jax.numpy as jnp
from jax.experimental import pallas as pl
from jax.experimental.pallas import tpu as pltpu


def _cdiv(a, b):
    return -(-a // b)


def _merge_matrix(C, src_idx, dst_idx):
    """Build M (C, C_out), float64 numpy, such that merging(x) == x @ M.

    Reproduces torch `merging(..., mode='mean')`:
      - src = x[..., 0::2], dst = x[..., 1::2]
      - dst.scatter_reduce(-1, dst_idx, src[..., src_idx], 'mean') (include_self)
      - interleave src/dst back, drop the merged even channels (2*src_idx).
    Indices must be concrete (host) values.
    """
    src_idx = np.asarray(src_idx, dtype=np.int64)
    dst_idx = np.asarray(dst_idx, dtype=np.int64)
    r = src_idx.shape[0]
    dst_C = C // 2
    count = np.zeros(dst_C, dtype=np.float64)
    for k in range(r):
        count[dst_idx[k]] += 1.0
    M = np.zeros((C, C), dtype=np.float64)
    # even output channels keep the even (src) inputs unchanged
    for i in range((C + 1) // 2):
        M[2 * i, 2 * i] = 1.0
    # odd output channels: mean of self + all scattered source channels
    for j in range(dst_C):
        M[2 * j + 1, 2 * j + 1] = 1.0 / (1.0 + count[j])
    for k in range(r):
        j = dst_idx[k]
        M[2 * src_idx[k], 2 * j + 1] += 1.0 / (1.0 + count[j])
    # drop merged source channels
    drop = set((2 * src_idx).tolist())
    keep = [c for c in range(C) if c not in drop]
    return M[:, keep]


def _merge_kernel(x_ref, m_ref, o_ref):
    # Hot path: one MXU matmul per row tile, f32 accumulation.
    o_ref[...] = jnp.dot(
        x_ref[...], m_ref[...], preferred_element_type=jnp.float32
    ).astype(o_ref.dtype)


def cm_module_forward(
    x,
    src_idx,
    dst_idx,
    have_merge=True,
    *,
    target_rows_per_step=2048,
    max_packed_m_bytes=8 << 20,
):
    """Forward pass of CMModule. Identity when have_merge is False."""
    if not have_merge:
        return x

    B, N, C = x.shape
    dtype = x.dtype
    itemsize = dtype.itemsize
    sublane = max(8, 32 // itemsize)  # 8 for f32, 16 for bf16, 32 for int8

    M_np = _merge_matrix(C, src_idx, dst_idx)  # (C, C_out), float64 host matrix
    C_out = M_np.shape[1]
    rows = B * N

    # --- lane-dense packing factor G: make output last dim a multiple of 128 ---
    if C_out % 128 == 0:
        G = 1
    else:
        G = 128 // math.gcd(C_out, 128)
        if (G * C) * (G * C_out) * itemsize > max_packed_m_bytes:
            G = 1  # block-diag matrix would be too large; fall back
    # TODO(synk): for very large C the dense (C, C_out) matrix no longer fits
    # VMEM; a gather/scatter formulation would be needed there.

    if G > 1:
        M_big = np.kron(np.eye(G), M_np)  # block_diag(M, ..., M), G copies
    else:
        M_big = M_np
    M_dev = jnp.asarray(M_big, dtype=dtype)

    # --- row tiling in "super-rows" (G packed rows each) ---
    R_super = _cdiv(rows, G)
    bytes_per_super_row = G * (C + C_out) * itemsize
    max_ts_by_vmem = max(sublane, (8 << 20) // (2 * bytes_per_super_row))
    TS = min(max(1, target_rows_per_step // G), max_ts_by_vmem)
    if R_super >= 2 * sublane:
        # keep >= 2 grid steps (both v7x TensorCores get work) and sublane align
        TS = min(TS, R_super // 2)
        TS = max(sublane, (TS // sublane) * sublane)
    else:
        TS = min(TS, R_super)
        if TS != R_super:
            TS = min(_cdiv(TS, sublane) * sublane, R_super)
    n_steps = _cdiv(R_super, TS)
    R_pad = n_steps * TS
    rows_pad = R_pad * G

    # --- pack rows: (rows, C) -> zero-pad -> (R_pad, G*C) super-rows ---
    x2d = x.reshape(rows, C)
    if rows_pad != rows:
        x2d = jnp.pad(x2d, ((0, rows_pad - rows), (0, 0)))
    x_packed = x2d.reshape(R_pad, G * C)

    # --- compiler params: raise scoped-VMEM limit only if the working set needs it
    blk_bytes = 2 * TS * G * (C + C_out) * itemsize          # double-buffered x+out
    m_bytes = 2 * (G * C) * (G * C_out) * itemsize           # M (default buffering)
    est = blk_bytes + m_bytes + (2 << 20)
    ckw = {"dimension_semantics": ("parallel",)}
    if est > (12 << 20):  # would not fit v5e's 16 MiB scoped-VMEM default
        ckw["vmem_limit_bytes"] = int(min(max(est, 16 << 20), 48 << 20))

    out_packed = pl.pallas_call(
        _merge_kernel,
        out_shape=jax.ShapeDtypeStruct((R_pad, G * C_out), dtype),
        grid=(n_steps,),
        in_specs=[
            pl.BlockSpec((TS, G * C), lambda i: (i, 0)),
            # M is constant across the grid (block index (0, 0)); Pallas skips re-DMA
            pl.BlockSpec((G * C, G * C_out), lambda i: (0, 0)),
        ],
        out_specs=pl.BlockSpec((TS, G * C_out), lambda i: (i, 0)),
        compiler_params=pltpu.CompilerParams(**ckw),
    )(x_packed, M_dev)

    out2d = out_packed.reshape(rows_pad, C_out)[:rows]
    return out2d.reshape(B, N, C_out)


def _merging_ref(x, src_idx, dst_idx):
    """Pure-numpy reference of torch `merging(..., mode='mean')`."""
    x = np.asarray(x, dtype=np.float64)
    B, N, C = x.shape
    src = x[..., 0::2].copy()
    dst = x[..., 1::2].copy()
    src_idx = np.asarray(src_idx)
    dst_idx = np.asarray(dst_idx)
    count = np.zeros(dst.shape[-1])
    accum = np.zeros_like(dst)
    for k in range(len(src_idx)):
        accum[..., dst_idx[k]] += src[..., src_idx[k]]
        count[dst_idx[k]] += 1.0
    dst = (dst + accum) / (1.0 + count)
    merged = np.empty_like(x)
    merged[..., 0::2] = src
    merged[..., 1::2] = dst
    drop = set((2 * src_idx).tolist())
    keep = [c for c in range(C) if c not in drop]
    return merged[..., keep]


if __name__ == "__main__":
    key = jax.random.PRNGKey(0)

    # Deterministic buffers (in PyTorch these come from find_similar_channels;
    # forward only consumes them). src_idx indexes the even half, dst_idx the odd.
    src_idx = np.array([0, 3, 5, 7], dtype=np.int32)
    dst_idx = np.array([2, 2, 9, 14], dtype=np.int32)  # duplicate dst exercises 'mean'

    # --- test 1: small shape (single grid step, lane-packed) ---
    B, N, C = 2, 8, 32
    r = 4  # num_merged_channels
    x = jax.random.normal(key, (B, N, C), dtype=jnp.float32)
    out = jax.block_until_ready(cm_module_forward(x, src_idx, dst_idx, have_merge=True))
    assert out.shape == (B, N, C - r)
    np.testing.assert_allclose(
        np.asarray(out), _merging_ref(x, src_idx, dst_idx), rtol=1e-5, atol=1e-5
    )

    # --- test 2: non-divisible row count -> multi-step grid + zero padding ---
    B2, N2 = 2, 1100
    x2 = jax.random.normal(jax.random.PRNGKey(1), (B2, N2, C), dtype=jnp.float32)
    out2 = jax.block_until_ready(cm_module_forward(x2, src_idx, dst_idx, have_merge=True))
    assert out2.shape == (B2, N2, C - r)
    np.testing.assert_allclose(
        np.asarray(out2), _merging_ref(x2, src_idx, dst_idx), rtol=1e-5, atol=1e-5
    )

    # --- identity path (have_merge=False) ---
    assert cm_module_forward(x, src_idx, dst_idx, have_merge=False) is x

    print("KERNEL_OK")
</pallas_src>

<mosaic_0001>
module attributes {stable_mosaic.version = 11 : i64} {
  func.func @_merge_kernel(%arg0: i32, %arg1: memref<1x1024xf32, #tpu.memory_space<vmem>>, %arg2: memref<1024x896xf32, #tpu.memory_space<vmem>>, %arg3: memref<1x896xf32, #tpu.memory_space<vmem>>) attributes {dimension_semantics = [#tpu.dimension_semantics<parallel>], iteration_bounds = array<i64: 1>, scalar_prefetch = 0 : i64, scratch_operands = 0 : i64, tpu.core_type = #tpu.core_type<tc>, window_params = [{transform_indices = @transform_0, window_bounds = array<i64: 1, 1024>}, {pipeline_mode = #tpu.pipeline_mode<synchronous>, transform_indices = @transform_1, window_bounds = array<i64: 1024, 896>}, {transform_indices = @transform_2, window_bounds = array<i64: 1, 896>}]} {
    %c0 = arith.constant 0 : index
    %c0_0 = arith.constant 0 : index
    %0 = vector.load %arg1[%c0, %c0_0] : memref<1x1024xf32, #tpu.memory_space<vmem>>, vector<1x1024xf32>
    %c0_1 = arith.constant 0 : index
    %c0_2 = arith.constant 0 : index
    %1 = vector.load %arg2[%c0_1, %c0_2] : memref<1024x896xf32, #tpu.memory_space<vmem>>, vector<1024x896xf32>
    %cst = arith.constant dense<0.000000e+00> : vector<1x896xf32>
    %2 = tpu.matmul %0, %1, %cst {dimension_numbers = #tpu.dot_dimension_numbers<[1], [0], [0], [1], [0, 0, 1, 1], [], []>} : vector<1x1024xf32>, vector<1024x896xf32>, vector<1x896xf32> -> vector<1x896xf32>
    %c0_3 = arith.constant 0 : index
    %c0_4 = arith.constant 0 : index
    %3 = vector.load %arg3[%c0_3, %c0_4] : memref<1x896xf32, #tpu.memory_space<vmem>>, vector<1x896xf32>
    tpu.vector_store %arg3[%c0_3, %c0_4], %2 {strides = array<i32>} : memref<1x896xf32, #tpu.memory_space<vmem>>, vector<1x896xf32>,
    return
  }
  func.func @transform_0(%arg0: i32) -> (i32, i32) {
    %c0_i32 = arith.constant 0 : i32
    %c0_i32_0 = arith.constant 0 : i32
    return %arg0, %c0_i32 : i32, i32
  }
  func.func @transform_1(%arg0: i32) -> (i32, i32) {
    %c0_i32 = arith.constant 0 : i32
    %c0_i32_0 = arith.constant 0 : i32
    %c0_i32_1 = arith.constant 0 : i32
    return %c0_i32, %c0_i32_0 : i32, i32
  }
  func.func @transform_2(%arg0: i32) -> (i32, i32) {
    %c0_i32 = arith.constant 0 : i32
    %c0_i32_0 = arith.constant 0 : i32
    return %arg0, %c0_i32 : i32, i32
  }
}

</mosaic_0001>

<bundles_post_ra>
// kernel: tpu_custom_call.1
= control target key start
LH: loop header
LB: loop body
LE: loop exit
PB: predicated region body
PF: predicated region fallthrough
CT: control target
= control target key end

     0   :  { %7 = vsyncpa [#allocation3], 0  ;;  %s3467_s0 = inlined_call_operand.hbm [shape: f32[1,1024], index: 0, kind: input, shape index: {}]   ;;  %s3468_s1 = inlined_call_operand.hbm [shape: f32[1024,896], index: 1, kind: input, shape index: {}]   ;;  %s3469_s2 = inlined_call_operand.hbm [shape: f32[1,896], index: 2, kind: output, shape index: {}]  }
   0x1   :  { %8 = vsyncpa [#allocation6], 0 }
   0x2   :  { %9 = vsyncpa [#allocation4], 0  ;;  %s3318_s9 = smov [#allocation2]   ;;  %s3319_s11 = smov [#allocation5]  }
   0x3   :  { %s16_s10 = sshll.u32 %s3318_s9, 4  ;;  %s25_s12 = sshll.u32 %s3319_s11, 4  ;;  %s17_s10 = int_to_ptr.vmem [resolvable:$true] %s16_s10  ;;  %s3339_s12 = int_to_ptr.vmem [resolvable:$true] %s25_s12 }
   0x4   :  { %s3246_s15 = scalar_lea.hbm %s3467_s0, 128 }
   0x5   :  { %p3247_p0 = scmp.ne.s32.totalorder %s3467_s0, %s3246_s15  ;;  %p3250_p1 = scmp.lt.u32.totalorder %s3246_s15, %s3467_s0 }
   0x7   :  { %p3252_p2 = pnand %p3250_p1, %p3247_p0 }
   0x9   :  { %3255 = shalt.err (!%p3252_p2)
}
   0xa   :  { %s3256_s20 = scalar_lea.vmem %s17_s10, 128  ;;  %p3261_p4 = scmp.lt.s32.totalorder %s17_s10, %s17_s10 }
   0xb   :  { %p3257_p3 = scmp.ne.s32.totalorder %s17_s10, %s3256_s20  ;;  %p3262_p5 = scmp.lt.s32.totalorder %s3256_s20, %s3256_s20 }
   0xd   :  { %p3263_p6 = por %p3262_p5, %p3261_p4 }
   0xf   :  { %p3264_p7 = pnand %p3263_p6, %p3257_p3 }
  0x11   :  { %3267 = shalt.err (!%p3264_p7)
}
  0x12   :  { %19 = dma.hbm_to_vmem [thread:$0]  %s3467_s0, 128, %s17_s10, [#allocation3]  }
  0x13   :  { %s3268_s25 = scalar_lea.hbm %s3468_s1, 114688 }
  0x14   :  { %p3269_p8 = scmp.ne.s32.totalorder %s3468_s1, %s3268_s25  ;;  %p3272_p9 = scmp.lt.u32.totalorder %s3268_s25, %s3468_s1 }
  0x16   :  { %p3274_p10 = pnand %p3272_p9, %p3269_p8 }
  0x18   :  { %3277 = shalt.err (!%p3274_p10)
}
  0x19   :  { %s3278_s30 = scalar_lea.vmem %s3339_s12, 114688  ;;  %p3283_p12 = scmp.lt.s32.totalorder %s3339_s12, %s3339_s12 }
  0x1a   :  { %p3279_p11 = scmp.ne.s32.totalorder %s3339_s12, %s3278_s30  ;;  %p3284_p13 = scmp.lt.s32.totalorder %s3278_s30, %s3278_s30 }
  0x1c   :  { %p3285_p0 = por %p3284_p13, %p3283_p12 }
  0x1e   :  { %p3286_p1 = pnand %p3285_p0, %p3279_p11 }
  0x20   :  { %3289 = shalt.err (!%p3286_p1)
}
  0x21   :  { %s3320_s0 = smov 896   ;;  %s3321_s3 = smov 56  }
  0x22   :  { %31 = dma.hbm_to_vmem [thread:$0]  %s3468_s1, 114688, %s3339_s12, [#allocation6], %s3320_s0, %s3320_s0, %s3321_s3  }
  0x23   :  { %3312 = dma.done.wait [#allocation3], 128  }
  0x24   :  { %3313 = vsyncadd [#allocation3], 4294967168 }
  0x25   :  { %3314 = dma.done.wait [#allocation6], 114688  }
  0x26   :  { %3315 = vsyncadd [#allocation6], 4294852608  ;;  %v40_v0 = vld [vmem:[#allocation5 + $0x8] sm:$0xff]  ;;  %v47_v1 = vld [vmem:[#allocation5 + $0x40] sm:$0xff]  ;;  %s3323_s1 = smov [#allocation7]  }
  0x27   :  { %v264_v2 = vld [vmem:[#allocation5 + $0x708] sm:$0xff]  ;;  %v2325_v3 = vpack.c.bf16 %v47_v1, %v40_v0  ;;  %v271_v4 = vld [vmem:[#allocation5 + $0x740] sm:$0xff]  ;;  %v46_v6 = vld [vmem:[#allocation5 + $0x38] sm:$0xff]  ;;  %s2175_s6 = sshll.u32 %s3323_s1, 4  ;;  %s2176_s6 = int_to_ptr.vmem [resolvable:$true] %s2175_s6 }
  0x28   :  { %v39_v5 = vld [vmem:[#allocation5] sm:$0xff]  ;;  %v2389_v7 = vpack.c.bf16 %v271_v4, %v264_v2  ;;  %v270_v10 = vld [vmem:[#allocation5 + $0x738] sm:$0xff]  ;;  %v61_v13 = vld [vmem:[#allocation5 + $0xb0] sm:$0xff]  ;;  %s3290_s7 = scalar_lea.vmem %s2176_s6, 112  ;;  %s3294_s8 = scalar_lea.vmem %s2176_s6, 128 }
  0x29   :  { %v2327_v8 = vpack.c.bf16 %v46_v6, %v39_v5  ;;  %v263_v9 = vld [vmem:[#allocation5 + $0x700] sm:$0xff]  ;;  %v54_v11 = vld [vmem:[#allocation5 + $0x78] sm:$0xff]  ;;  %2326 = vmatprep.subr.bf16.mxu1 %v2325_v3  ;;  %v285_v15 = vld [vmem:[#allocation5 + $0x7b0] sm:$0xff]  ;;  %p3291_p2 = scmp.ne.s32.totalorder %s2176_s6, %s3290_s7  ;;  %p3295_p3 = scmp.lt.s32.totalorder %s2176_s6, %s2176_s6 }
  0x2a   :  { %v2391_v12 = vpack.c.bf16 %v270_v10, %v263_v9  ;;  %v278_v14 = vld [vmem:[#allocation5 + $0x778] sm:$0xff]  ;;  %2390 = vmatprep.subr.bf16.mxu0 %v2389_v7  ;;  %v2329_v16 = vpack.c.bf16 %v61_v13, %v54_v11  ;;  %v53_v18 = vld [vmem:[#allocation5 + $0x70] sm:$0xff]  ;;  %v60_v19 = vld [vmem:[#allocation5 + $0xa8] sm:$0xff]  ;;  %p3296_p4 = scmp.lt.s32.totalorder %s3294_s8, %s3290_s7 }
  0x2b   :  { %2328 = vmatpush1.bf16.msra.mxu1 %v2327_v8  ;;  %v2393_v17 = vpack.c.bf16 %v285_v15, %v278_v14  ;;  %v277_v20 = vld [vmem:[#allocation5 + $0x770] sm:$0xff]  ;;  %v2331_v21 = vpack.c.bf16 %v60_v19, %v53_v18  ;;  %v284_v22 = vld [vmem:[#allocation5 + $0x7a8] sm:$0xff]  ;;  %v75_v24 = vld [vmem:[#allocation5 + $0x120] sm:$0xff] }
  0x2c   :  { %2392 = vmatpush1.bf16.msra.mxu0 %v2391_v12  ;;  %v68_v23 = vld [vmem:[#allocation5 + $0xe8] sm:$0xff]  ;;  %2330 = vmatprep.subr.bf16.mxu1 %v2329_v16  ;;  %v2395_v25 = vpack.c.bf16 %v284_v22, %v277_v20  ;;  %v299_v28 = vld [vmem:[#allocation5 + $0x820] sm:$0xff]  ;;  %v74_v31 = vld [vmem:[#allocation5 + $0x118] sm:$0xff]  ;;  %p3297_p5 = por %p3296_p4, %p3295_p3 }
  0x2d   :  { %2394 = vmatprep.subr.bf16.mxu0 %v2393_v17  ;;  %v2333_v26 = vpack.c.bf16 %v75_v24, %v68_v23  ;;  %v292_v27 = vld [vmem:[#allocation5 + $0x7e8] sm:$0xff]  ;;  %v67_v29 = vld [vmem:[#allocation5 + $0xe0] sm:$0xff]  ;;  %v298_v33 = vld [vmem:[#allocation5 + $0x818] sm:$0xff] }
  0x2e   :  { %v2397_v30 = vpack.c.bf16 %v299_v28, %v292_v27  ;;  %v291_v32 = vld [vmem:[#allocation5 + $0x7e0] sm:$0xff]  ;;  %v2335_v34 = vpack.c.bf16 %v74_v31, %v67_v29  ;;  %v82_v35 = vld [vmem:[#allocation5 + $0x158] sm:$0xff]  ;;  %v89_v36 = vld [vmem:[#allocation5 + $0x190] sm:$0xff]  ;;  %p3298_p6 = pnand %p3297_p5, %p3291_p2 }
  0x2f   :  { %2332 = vmatpush1.bf16.msra.mxu1 %v2331_v21  ;;  %v306_v37 = vld [vmem:[#allocation5 + $0x858] sm:$0xff]  ;;  %v2399_v38 = vpack.c.bf16 %v298_v33, %v291_v32  ;;  %v2337_v39 = vpack.c.bf16 %v89_v36, %v82_v35  ;;  %v313_v40 = vld [vmem:[#allocation5 + $0x890] sm:$0xff]  ;;  %v88_v42 = vld [vmem:[#allocation5 + $0x188] sm:$0xff] }
  0x30   :  { %2396 = vmatpush1.bf16.msra.mxu0 %v2395_v25  ;;  %2334 = vmatprep.subr.bf16.mxu1 %v2333_v26  ;;  %v81_v41 = vld [vmem:[#allocation5 + $0x150] sm:$0xff]  ;;  %v2401_v43 = vpack.c.bf16 %v313_v40, %v306_v37  ;;  %v312_v45 = vld [vmem:[#allocation5 + $0x888] sm:$0xff]  ;;  %v103_v47 = vld [vmem:[#allocation5 + $0x200] sm:$0xff] }
  0x31   :  { %2398 = vmatprep.subr.bf16.mxu0 %v2397_v30  ;;  %v305_v44 = vld [vmem:[#allocation5 + $0x850] sm:$0xff]  ;;  %v96_v46 = vld [vmem:[#allocation5 + $0x1c8] sm:$0xff]  ;;  %v327_v49 = vld [vmem:[#allocation5 + $0x900] sm:$0xff]  ;;  %v2339_v50 = vpack.c.bf16 %v88_v42, %v81_v41 }
  0x32   :  { %v320_v48 = vld [vmem:[#allocation5 + $0x8c8] sm:$0xff]  ;;  %v2403_v51 = vpack.c.bf16 %v312_v45, %v305_v44  ;;  %v2341_v52 = vpack.c.bf16 %v103_v47, %v96_v46  ;;  %v95_v53 = vld [vmem:[#allocation5 + $0x1c0] sm:$0xff]  ;;  %v102_v54 = vld [vmem:[#allocation5 + $0x1f8] sm:$0xff]  ;;  %v936_v46 = vlaneseq }
  0x33   :  { %2336 = vmatpush1.bf16.msra.mxu1 %v2335_v34  ;;  %v319_v55 = vld [vmem:[#allocation5 + $0x8c0] sm:$0xff]  ;;  %v2405_v56 = vpack.c.bf16 %v327_v49, %v320_v48  ;;  %v326_v57 = vld [vmem:[#allocation5 + $0x8f8] sm:$0xff]  ;;  %v117_v59 = vld [vmem:[#allocation5 + $0x270] sm:$0xff]  ;;  %v2343_v62 = vpack.c.bf16 %v102_v54, %v95_v53 }
  0x34   :  { %2400 = vmatpush1.bf16.msra.mxu0 %v2399_v38  ;;  %2338 = vmatprep.subr.bf16.mxu1 %v2337_v39  ;;  %v110_v58 = vld [vmem:[#allocation5 + $0x238] sm:$0xff]  ;;  %v341_v61 = vld [vmem:[#allocation5 + $0x970] sm:$0xff]  ;;  %v2407_v63 = vpack.c.bf16 %v326_v57, %v319_v55  ;;  %v116_v2 = vld [vmem:[#allocation5 + $0x268] sm:$0xff]  ;;  %vm2166_vm0 = vcmp.lt.s32.totalorder %v936_v46, 896 }
  0x35   :  { %2402 = vmatprep.subr.bf16.mxu0 %v2401_v43  ;;  %v334_v60 = vld [vmem:[#allocation5 + $0x938] sm:$0xff]  ;;  %v2345_v0 = vpack.c.bf16 %v117_v59, %v110_v58  ;;  %v109_v1 = vld [vmem:[#allocation5 + $0x230] sm:$0xff]  ;;  %v340_v5 = vld [vmem:[#allocation5 + $0x968] sm:$0xff]  ;;  %v3371_v59 = vshrl.u32 %v936_v46, 7 }
  0x36   :  { %v333_v3 = vld [vmem:[#allocation5 + $0x930] sm:$0xff]  ;;  %v2409_v4 = vpack.c.bf16 %v341_v61, %v334_v60  ;;  %v124_v6 = vld [vmem:[#allocation5 + $0x2a8] sm:$0xff]  ;;  %v131_v7 = vld [vmem:[#allocation5 + $0x2e0] sm:$0xff]  ;;  %v2347_v10 = vpack.c.bf16 %v116_v2, %v109_v1 }
  0x37   :  { %2340 = vmatpush1.bf16.msra.mxu1 %v2339_v50  ;;  %v348_v8 = vld [vmem:[#allocation5 + $0x9a8] sm:$0xff]  ;;  %v355_v9 = vld [vmem:[#allocation5 + $0x9e0] sm:$0xff]  ;;  %v2411_v11 = vpack.c.bf16 %v340_v5, %v333_v3  ;;  %v2349_v12 = vpack.c.bf16 %v131_v7, %v124_v6  ;;  %v130_v14 = vld [vmem:[#allocation5 + $0x2d8] sm:$0xff] }
  0x38   :  { %2404 = vmatpush1.bf16.msra.mxu0 %v2403_v51  ;;  %2342 = vmatprep.subr.bf16.mxu1 %v2341_v52  ;;  %v123_v13 = vld [vmem:[#allocation5 + $0x2a0] sm:$0xff]  ;;  %v2413_v16 = vpack.c.bf16 %v355_v9, %v348_v8  ;;  %v354_v17 = vld [vmem:[#allocation5 + $0x9d8] sm:$0xff]  ;;  %v145_v19 = vld [vmem:[#allocation5 + $0x350] sm:$0xff]  ;;  %v942_v8 = vsub.s32 1, %v3371_v59  ;;  %v950_v9 = vsub.s32 3, %v3371_v59 }
  0x39   :  { %2406 = vmatprep.subr.bf16.mxu0 %v2405_v56  ;;  %v347_v15 = vld [vmem:[#allocation5 + $0x9a0] sm:$0xff]  ;;  %v138_v18 = vld [vmem:[#allocation5 + $0x318] sm:$0xff]  ;;  %v369_v21 = vld [vmem:[#allocation5 + $0xa50] sm:$0xff]  ;;  %v2351_v22 = vpack.c.bf16 %v130_v14, %v123_v13 }
  0x3a   :  { %v362_v20 = vld [vmem:[#allocation5 + $0xa18] sm:$0xff]  ;;  %v2415_v23 = vpack.c.bf16 %v354_v17, %v347_v15  ;;  %v2353_v24 = vpack.c.bf16 %v145_v19, %v138_v18  ;;  %v137_v25 = vld [vmem:[#allocation5 + $0x310] sm:$0xff]  ;;  %v144_v26 = vld [vmem:[#allocation5 + $0x348] sm:$0xff] }
  0x3b   :  { %2344 = vmatpush1.bf16.msra.mxu1 %v2343_v62  ;;  %v361_v27 = vld [vmem:[#allocation5 + $0xa10] sm:$0xff]  ;;  %v2417_v28 = vpack.c.bf16 %v369_v21, %v362_v20  ;;  %v368_v29 = vld [vmem:[#allocation5 + $0xa48] sm:$0xff]  ;;  %v159_v31 = vld [vmem:[#allocation5 + $0x3c0] sm:$0xff]  ;;  %v2355_v34 = vpack.c.bf16 %v144_v26, %v137_v25 }
  0x3c   :  { %2408 = vmatpush1.bf16.msra.mxu0 %v2407_v63  ;;  %2346 = vmatprep.subr.bf16.mxu1 %v2345_v0  ;;  %v152_v30 = vld [vmem:[#allocation5 + $0x388] sm:$0xff]  ;;  %v383_v33 = vld [vmem:[#allocation5 + $0xac0] sm:$0xff]  ;;  %v2419_v35 = vpack.c.bf16 %v368_v29, %v361_v27  ;;  %v158_v38 = vld [vmem:[#allocation5 + $0x3b8] sm:$0xff] }
  0x3d   :  { %2410 = vmatprep.subr.bf16.mxu0 %v2409_v4  ;;  %v376_v32 = vld [vmem:[#allocation5 + $0xa88] sm:$0xff]  ;;  %v2357_v36 = vpack.c.bf16 %v159_v31, %v152_v30  ;;  %v151_v37 = vld [vmem:[#allocation5 + $0x380] sm:$0xff]  ;;  %v382_v41 = vld [vmem:[#allocation5 + $0xab8] sm:$0xff] }
  0x3e   :  { %v375_v39 = vld [vmem:[#allocation5 + $0xa80] sm:$0xff]  ;;  %v2421_v40 = vpack.c.bf16 %v383_v33, %v376_v32  ;;  %v166_v42 = vld [vmem:[#allocation5 + $0x3f8] sm:$0xff]  ;;  %v173_v43 = vld [vmem:[#allocation5 + $0x430] sm:$0xff]  ;;  %v2359_v47 = vpack.c.bf16 %v158_v38, %v151_v37 }
  0x3f   :  { %2348 = vmatpush1.bf16.msra.mxu1 %v2347_v10  ;;  %v390_v44 = vld [vmem:[#allocation5 + $0xaf8] sm:$0xff]  ;;  %v397_v45 = vld [vmem:[#allocation5 + $0xb30] sm:$0xff]  ;;  %v2423_v48 = vpack.c.bf16 %v382_v41, %v375_v39  ;;  %v2361_v49 = vpack.c.bf16 %v173_v43, %v166_v42  ;;  %v172_v51 = vld [vmem:[#allocation5 + $0x428] sm:$0xff] }
  0x40   :  { %2412 = vmatpush1.bf16.msra.mxu0 %v2411_v11  ;;  %2350 = vmatprep.subr.bf16.mxu1 %v2349_v12  ;;  %v165_v50 = vld [vmem:[#allocation5 + $0x3f0] sm:$0xff]  ;;  %v2425_v53 = vpack.c.bf16 %v397_v45, %v390_v44  ;;  %v396_v54 = vld [vmem:[#allocation5 + $0xb28] sm:$0xff]  ;;  %v187_v56 = vld [vmem:[#allocation5 + $0x4a0] sm:$0xff] }
  0x41   :  { %2414 = vmatprep.subr.bf16.mxu0 %v2413_v16  ;;  %v389_v52 = vld [vmem:[#allocation5 + $0xaf0] sm:$0xff]  ;;  %v180_v55 = vld [vmem:[#allocation5 + $0x468] sm:$0xff]  ;;  %v411_v58 = vld [vmem:[#allocation5 + $0xba0] sm:$0xff]  ;;  %v2363_v60 = vpack.c.bf16 %v172_v51, %v165_v50 }
  0x42   :  { %v404_v57 = vld [vmem:[#allocation5 + $0xb68] sm:$0xff]  ;;  %v2427_v61 = vpack.c.bf16 %v396_v54, %v389_v52  ;;  %v2365_v62 = vpack.c.bf16 %v187_v56, %v180_v55  ;;  %v179_v63 = vld [vmem:[#allocation5 + $0x460] sm:$0xff]  ;;  %v186_v0 = vld [vmem:[#allocation5 + $0x498] sm:$0xff] }
  0x43   :  { %2352 = vmatpush1.bf16.msra.mxu1 %v2351_v22  ;;  %v403_v1 = vld [vmem:[#allocation5 + $0xb60] sm:$0xff]  ;;  %v2429_v2 = vpack.c.bf16 %v411_v58, %v404_v57  ;;  %v410_v3 = vld [vmem:[#allocation5 + $0xb98] sm:$0xff]  ;;  %v201_v5 = vld [vmem:[#allocation5 + $0x510] sm:$0xff]  ;;  %v2367_v10 = vpack.c.bf16 %v186_v0, %v179_v63 }
  0x44   :  { %2416 = vmatpush1.bf16.msra.mxu0 %v2415_v23  ;;  %2354 = vmatprep.subr.bf16.mxu1 %v2353_v24  ;;  %v194_v4 = vld [vmem:[#allocation5 + $0x4d8] sm:$0xff]  ;;  %v425_v7 = vld [vmem:[#allocation5 + $0xc10] sm:$0xff]  ;;  %v2431_v12 = vpack.c.bf16 %v410_v3, %v403_v1  ;;  %v200_v14 = vld [vmem:[#allocation5 + $0x508] sm:$0xff] }
  0x45   :  { %2418 = vmatprep.subr.bf16.mxu0 %v2417_v28  ;;  %v418_v6 = vld [vmem:[#allocation5 + $0xbd8] sm:$0xff]  ;;  %v193_v11 = vld [vmem:[#allocation5 + $0x4d0] sm:$0xff]  ;;  %v2369_v13 = vpack.c.bf16 %v201_v5, %v194_v4  ;;  %v424_v16 = vld [vmem:[#allocation5 + $0xc08] sm:$0xff] }
  0x46   :  { %v417_v15 = vld [vmem:[#allocation5 + $0xbd0] sm:$0xff]  ;;  %v2433_v17 = vpack.c.bf16 %v425_v7, %v418_v6  ;;  %v208_v18 = vld [vmem:[#allocation5 + $0x548] sm:$0xff]  ;;  %v215_v19 = vld [vmem:[#allocation5 + $0x580] sm:$0xff]  ;;  %v2371_v25 = vpack.c.bf16 %v200_v14, %v193_v11 }
  0x47   :  { %2356 = vmatpush1.bf16.msra.mxu1 %v2355_v34  ;;  %v3375_v20 = vld [vmem:[#allocation2] sm:$0xff]  ;;  %v432_v21 = vld [vmem:[#allocation5 + $0xc48] sm:$0xff]  ;;  %v439_v22 = vld [vmem:[#allocation5 + $0xc80] sm:$0xff]  ;;  %v2435_v26 = vpack.c.bf16 %v424_v16, %v417_v15  ;;  %v2373_v27 = vpack.c.bf16 %v215_v19, %v208_v18 }
  0x48   :  { %2420 = vmatpush1.bf16.msra.mxu0 %v2419_v35  ;;  %2358 = vmatprep.subr.bf16.mxu1 %v2357_v36  ;;  %v3378_v23 = vrot.slane %v3375_v20, %v942_v8  ;;  %v3381_v24 = vrot.slane %v3375_v20, %v950_v9  ;;  %v207_v28 = vld [vmem:[#allocation5 + $0x540] sm:$0xff]  ;;  %v214_v29 = vld [vmem:[#allocation5 + $0x578] sm:$0xff]  ;;  %v2437_v31 = vpack.c.bf16 %v439_v22, %v432_v21  ;;  %v229_v34 = vld [vmem:[#allocation5 + $0x5f0] sm:$0xff]  ;;  %v938_v9 = vsub.s32 0, %v3371_v59 }
  0x49   :  { %2422 = vmatprep.subr.bf16.mxu0 %v2421_v40  ;;  %v431_v30 = vld [vmem:[#allocation5 + $0xc40] sm:$0xff]  ;;  %v438_v32 = vld [vmem:[#allocation5 + $0xc78] sm:$0xff]  ;;  %v453_v36 = vld [vmem:[#allocation5 + $0xcf0] sm:$0xff]  ;;  %v2375_v37 = vpack.c.bf16 %v214_v29, %v207_v28 }
  0x4a   :  { %v222_v33 = vld [vmem:[#allocation5 + $0x5b8] sm:$0xff]  ;;  %1040 = vmatprep.mubr.f32.mxu1 %v3378_v23  ;;  %1111 = vmatprep.mubr.f32.mxu0 %v3381_v24  ;;  %v2439_v38 = vpack.c.bf16 %v438_v32, %v431_v30  ;;  %v221_v40 = vld [vmem:[#allocation5 + $0x5b0] sm:$0xff]  ;;  %v228_v41 = vld [vmem:[#allocation5 + $0x5e8] sm:$0xff] }
  0x4b   :  { %2360 = vmatpush1.bf16.msra.mxu1 %v2359_v47  ;;  %v446_v35 = vld [vmem:[#allocation5 + $0xcb8] sm:$0xff]  ;;  %v2377_v39 = vpack.c.bf16 %v229_v34, %v222_v33  ;;  %v445_v42 = vld [vmem:[#allocation5 + $0xcb0] sm:$0xff]  ;;  %v452_v44 = vld [vmem:[#allocation5 + $0xce8] sm:$0xff]  ;;  %v2379_v50 = vpack.c.bf16 %v228_v41, %v221_v40 }
  0x4c   :  { %2424 = vmatpush1.bf16.msra.mxu0 %v2423_v48  ;;  %2362 = vmatprep.subr.bf16.mxu1 %v2361_v49  ;;  %v2441_v43 = vpack.c.bf16 %v453_v36, %v446_v35  ;;  %v236_v45 = vld [vmem:[#allocation5 + $0x628] sm:$0xff]  ;;  %v243_v47 = vld [vmem:[#allocation5 + $0x660] sm:$0xff]  ;;  %v2443_v51 = vpack.c.bf16 %v452_v44, %v445_v42  ;;  %v242_v54 = vld [vmem:[#allocation5 + $0x658] sm:$0xff] }
  0x4d   :  { %2426 = vmatprep.subr.bf16.mxu0 %v2425_v53  ;;  %v460_v48 = vld [vmem:[#allocation5 + $0xd28] sm:$0xff]  ;;  %v467_v49 = vld [vmem:[#allocation5 + $0xd60] sm:$0xff]  ;;  %v2381_v52 = vpack.c.bf16 %v243_v47, %v236_v45  ;;  %v466_v57 = vld [vmem:[#allocation5 + $0xd58] sm:$0xff] }
  0x4e   :  { %v235_v53 = vld [vmem:[#allocation5 + $0x620] sm:$0xff]  ;;  %v2445_v56 = vpack.c.bf16 %v467_v49, %v460_v48  ;;  %v250_v58 = vld [vmem:[#allocation5 + $0x698] sm:$0xff]  ;;  %v256_v3 = vld [vmem:[#allocation5 + $0x6c8] sm:$0xff] }
  0x4f   :  { %2364 = vmatpush1.bf16.msra.mxu1 %v2363_v60  ;;  %v459_v55 = vld [vmem:[#allocation5 + $0xd20] sm:$0xff]  ;;  %v257_v60 = vld [vmem:[#allocation5 + $0x6d0] sm:$0xff]  ;;  %v2383_v63 = vpack.c.bf16 %v242_v54, %v235_v53  ;;  %v480_v6 = vld [vmem:[#allocation5 + $0xdc8] sm:$0xff] }
  0x50   :  { %2428 = vmatpush1.bf16.msra.mxu0 %v2427_v61  ;;  %2366 = vmatprep.subr.bf16.mxu1 %v2365_v62  ;;  %v474_v61 = vld [vmem:[#allocation5 + $0xd98] sm:$0xff]  ;;  %v481_v62 = vld [vmem:[#allocation5 + $0xdd0] sm:$0xff]  ;;  %v2447_v0 = vpack.c.bf16 %v466_v57, %v459_v55  ;;  %v2385_v1 = vpack.c.bf16 %v257_v60, %v250_v58  ;;  %v495_v11 = vld [vmem:[#allocation5 + $0xe40] sm:$0xff] }
  0x51   :  { %2430 = vmatprep.subr.bf16.mxu0 %v2429_v2  ;;  %v249_v2 = vld [vmem:[#allocation5 + $0x690] sm:$0xff]  ;;  %v2449_v5 = vpack.c.bf16 %v481_v62, %v474_v61  ;;  %v42_v7 = vld [vmem:[#allocation5 + $0x18] sm:$0xff]  ;;  %v487_v16 = vld [vmem:[#allocation5 + $0xe00] sm:$0xff] }
  0x52   :  { %v473_v4 = vld [vmem:[#allocation5 + $0xd90] sm:$0xff]  ;;  %v48_v18 = vld [vmem:[#allocation5 + $0x48] sm:$0xff]  ;;  %v494_v21 = vld [vmem:[#allocation5 + $0xe38] sm:$0xff] }
  0x53   :  { %2368 = vmatpush1.bf16.msra.mxu1 %v2367_v10  ;;  %v49_v8 = vld [vmem:[#allocation5 + $0x50] sm:$0xff]  ;;  %v488_v10 = vld [vmem:[#allocation5 + $0xe08] sm:$0xff]  ;;  %v2451_v14 = vpack.c.bf16 %v480_v6, %v473_v4  ;;  %v502_v28 = vld [vmem:[#allocation5 + $0xe78] sm:$0xff]  ;;  %v2455_v32 = vpack.c.bf16 %v494_v21, %v487_v16 }
  0x54   :  { %2432 = vmatpush1.bf16.msra.mxu0 %v2431_v12  ;;  %2370 = vmatprep.subr.bf16.mxu1 %v2369_v13  ;;  %v2387_v12 = vpack.c.bf16 %v256_v3, %v249_v2  ;;  %v946_v13 = vsub.s32 2, %v3371_v59  ;;  %v2581_v15 = vpack.c.bf16 %v49_v8, %v42_v7  ;;  %v2453_v19 = vpack.c.bf16 %v495_v11, %v488_v10  ;;  %v56_v22 = vld [vmem:[#allocation5 + $0x88] sm:$0xff]  ;;  %v509_v29 = vld [vmem:[#allocation5 + $0xeb0] sm:$0xff]  ;;  %v55_v35 = vld [vmem:[#allocation5 + $0x80] sm:$0xff] }
  0x55   :  { %2434 = vmatprep.subr.bf16.mxu0 %v2433_v17  ;;  %v41_v17 = vld [vmem:[#allocation5 + $0x10] sm:$0xff]  ;;  %v62_v36 = vld [vmem:[#allocation5 + $0xb8] sm:$0xff]  ;;  %v516_v42 = vld [vmem:[#allocation5 + $0xee8] sm:$0xff] }
  0x56   :  { %v3392_v30 = vrot.slane %v3375_v20, %v946_v13  ;;  %v501_v34 = vld [vmem:[#allocation5 + $0xe70] sm:$0xff]  ;;  %v2587_v44 = vpack.c.bf16 %v62_v36, %v55_v35  ;;  %v515_v48 = vld [vmem:[#allocation5 + $0xee0] sm:$0xff]  ;;  %v84_v53 = vld [vmem:[#allocation5 + $0x168] sm:$0xff] }
  0x57   :  { %2372 = vmatpush1.bf16.msra.mxu1 %v2371_v25  ;;  %v63_v25 = vld [vmem:[#allocation5 + $0xc0] sm:$0xff]  ;;  %v77_v40 = vld [vmem:[#allocation5 + $0x130] sm:$0xff]  ;;  %v530_v55 = vld [vmem:[#allocation5 + $0xf58] sm:$0xff] }
  0x58   :  { %2436 = vmatpush1.bf16.msra.mxu0 %v2435_v26  ;;  %2374 = vmatprep.subr.bf16.mxu1 %v2373_v27  ;;  %v958_v26 = vsub.s32 5, %v3371_v59  ;;  %v3389_v27 = vrot.slane %v3375_v20, %v938_v9  ;;  %v2585_v33 = vpack.c.bf16 %v63_v25, %v56_v22  ;;  %v69_v49 = vld [vmem:[#allocation5 + $0xf0] sm:$0xff]  ;;  %v91_v54 = vld [vmem:[#allocation5 + $0x1a0] sm:$0xff]  ;;  %v98_v2 = vld [vmem:[#allocation5 + $0x1d8] sm:$0xff] }
  0x59   :  { %2438 = vmatprep.subr.bf16.mxu0 %v2437_v31  ;;  %v2583_v31 = vpack.c.bf16 %v48_v18, %v41_v17  ;;  %v2593_v60 = vpack.c.bf16 %v91_v54, %v84_v53  ;;  %v529_v61 = vld [vmem:[#allocation5 + $0xf50] sm:$0xff]  ;;  %v83_v62 = vld [vmem:[#allocation5 + $0x160] sm:$0xff]  ;;  %v544_v4 = vld [vmem:[#allocation5 + $0xfc8] sm:$0xff] }
  0x5a   :  { %v3395_v41 = vrot.slane %v3375_v20, %v958_v26  ;;  %v105_v3 = vld [vmem:[#allocation5 + $0x210] sm:$0xff]  ;;  %v543_v9 = vld [vmem:[#allocation5 + $0xfc0] sm:$0xff]  ;;  %v104_v11 = vld [vmem:[#allocation5 + $0x208] sm:$0xff] }
  0x5b   :  { %2376 = vmatpush1.bf16.msra.mxu1 %v2375_v37  ;;  %v2457_v37 = vpack.c.bf16 %v509_v29, %v502_v28  ;;  %v2597_v8 = vpack.c.bf16 %v105_v3, %v98_v2  ;;  %v97_v10 = vld [vmem:[#allocation5 + $0x1d0] sm:$0xff]  ;;  %v550_v13 = vld [vmem:[#allocation5 + $0xff8] sm:$0xff]  ;;  %v111_v25 = vld [vmem:[#allocation5 + $0x240] sm:$0xff] }
  0x5c   :  { %2440 = vmatpush1.bf16.msra.mxu0 %v2439_v38  ;;  %2378 = vmatprep.subr.bf16.mxu1 %v2377_v39  ;;  %v508_v38 = vld [vmem:[#allocation5 + $0xea8] sm:$0xff]  ;;  %v70_v39 = vld [vmem:[#allocation5 + $0xf8] sm:$0xff]  ;;  %v565_v17 = vld [vmem:[#allocation5 + $0x1070] sm:$0xff]  ;;  %v2599_v18 = vpack.c.bf16 %v104_v11, %v97_v10 }
  0x5d   :  { %2442 = vmatprep.subr.bf16.mxu0 %v2441_v43  ;;  %v523_v43 = vld [vmem:[#allocation5 + $0xf20] sm:$0xff]  ;;  %v2459_v45 = vpack.c.bf16 %v508_v38, %v501_v34  ;;  %v2589_v47 = vpack.c.bf16 %v77_v40, %v70_v39  ;;  %v558_v16 = vld [vmem:[#allocation5 + $0x1038] sm:$0xff]  ;;  %v557_v22 = vld [vmem:[#allocation5 + $0x1030] sm:$0xff] }
  0x5e   :  { %v118_v26 = vld [vmem:[#allocation5 + $0x278] sm:$0xff]  ;;  %v2473_v28 = vpack.c.bf16 %v565_v17, %v558_v16  ;;  %v564_v29 = vld [vmem:[#allocation5 + $0x1068] sm:$0xff]  ;;  %v579_v34 = vld [vmem:[#allocation5 + $0x10e0] sm:$0xff] }
  0x5f   :  { %2380 = vmatpush1.bf16.msra.mxu1 %v2379_v50  ;;  %v76_v50 = vld [vmem:[#allocation5 + $0x128] sm:$0xff]  ;;  %v2603_v35 = vpack.c.bf16 %v118_v26, %v111_v25  ;;  %v2475_v36 = vpack.c.bf16 %v564_v29, %v557_v22  ;;  %v571_v38 = vld [vmem:[#allocation5 + $0x10a0] sm:$0xff]  ;;  %v125_v39 = vld [vmem:[#allocation5 + $0x2b0] sm:$0xff] }
  0x60   :  { %2444 = vmatpush1.bf16.msra.mxu0 %v2443_v51  ;;  %2382 = vmatprep.subr.bf16.mxu1 %v2381_v52  ;;  %v2461_v51 = vpack.c.bf16 %v523_v43, %v516_v42  ;;  %v522_v52 = vld [vmem:[#allocation5 + $0xf18] sm:$0xff]  ;;  %v2591_v57 = vpack.c.bf16 %v76_v50, %v69_v49  ;;  %v132_v40 = vld [vmem:[#allocation5 + $0x2e8] sm:$0xff]  ;;  %v139_v53 = vld [vmem:[#allocation5 + $0x320] sm:$0xff] }
  0x61   :  { %2446 = vmatprep.subr.bf16.mxu0 %v2445_v56  ;;  %v537_v56 = vld [vmem:[#allocation5 + $0xf90] sm:$0xff]  ;;  %v2463_v58 = vpack.c.bf16 %v522_v52, %v515_v48  ;;  %v578_v43 = vld [vmem:[#allocation5 + $0x10d8] sm:$0xff]  ;;  %v2607_v49 = vpack.c.bf16 %v132_v40, %v125_v39  ;;  %v160_v3 = vld [vmem:[#allocation5 + $0x3c8] sm:$0xff] }
  0x62   :  { %v593_v48 = vld [vmem:[#allocation5 + $0x1150] sm:$0xff]  ;;  %v2479_v50 = vpack.c.bf16 %v578_v43, %v571_v38  ;;  %v146_v54 = vld [vmem:[#allocation5 + $0x358] sm:$0xff]  ;;  %v620_v17 = vld [vmem:[#allocation5 + $0x1228] sm:$0xff] }
  0x63   :  { %2384 = vmatpush1.bf16.msra.mxu1 %v2383_v63  ;;  %v90_v63 = vld [vmem:[#allocation5 + $0x198] sm:$0xff]  ;;  %v585_v52 = vld [vmem:[#allocation5 + $0x1110] sm:$0xff]  ;;  %v635_v22 = vld [vmem:[#allocation5 + $0x12a0] sm:$0xff] }
  0x64   :  { %2448 = vmatpush1.bf16.msra.mxu0 %v2447_v0  ;;  %2386 = vmatprep.subr.bf16.mxu1 %v2385_v1  ;;  %v2465_v0 = vpack.c.bf16 %v537_v56, %v530_v55  ;;  %v536_v1 = vld [vmem:[#allocation5 + $0xf88] sm:$0xff]  ;;  %v2595_v6 = vpack.c.bf16 %v90_v63, %v83_v62  ;;  %v2611_v62 = vpack.c.bf16 %v146_v54, %v139_v53  ;;  %v153_v2 = vld [vmem:[#allocation5 + $0x390] sm:$0xff]  ;;  %v627_v29 = vld [vmem:[#allocation5 + $0x1260] sm:$0xff] }
  0x65   :  { %2450 = vmatprep.subr.bf16.mxu0 %v2449_v5  ;;  %v551_v5 = vld [vmem:[#allocation5 + $0x1000] sm:$0xff]  ;;  %v2467_v7 = vpack.c.bf16 %v536_v1, %v529_v61  ;;  %v592_v56 = vld [vmem:[#allocation5 + $0x1148] sm:$0xff]  ;;  %v2615_v10 = vpack.c.bf16 %v160_v3, %v153_v2  ;;  %v649_v38 = vld [vmem:[#allocation5 + $0x1310] sm:$0xff] }
  0x66   :  { %v607_v61 = vld [vmem:[#allocation5 + $0x11c0] sm:$0xff]  ;;  %v2483_v63 = vpack.c.bf16 %v592_v56, %v585_v52  ;;  %v641_v43 = vld [vmem:[#allocation5 + $0x12d0] sm:$0xff] }
  0x67   :  { %2388 = vmatpush1.bf16.msra.mxu1 %v2387_v12  ;;  %v2469_v12 = vpack.c.bf16 %v551_v5, %v544_v4  ;;  %v599_v1 = vld [vmem:[#allocation5 + $0x1180] sm:$0xff]  ;;  %v606_v5 = vld [vmem:[#allocation5 + $0x11b8] sm:$0xff] }
  0x68   :  { %2452 = vmatpush1.bf16.msra.mxu0 %v2451_v14  ;;  %2582 = vmatprep.subr.bf16.mxu1 %v2581_v15  ;;  %v112_v14 = vld [vmem:[#allocation5 + $0x248] sm:$0xff]  ;;  %v119_v15 = vld [vmem:[#allocation5 + $0x280] sm:$0xff]  ;;  %v2487_v11 = vpack.c.bf16 %v606_v5, %v599_v1  ;;  %v677_v1 = vld [vmem:[#allocation5 + $0x13f0] sm:$0xff] }
  0x69   :  { %2454 = vmatprep.subr.bf16.mxu0 %v2453_v19  ;;  %v2471_v19 = vpack.c.bf16 %v550_v13, %v543_v9  ;;  %v2601_v21 = vpack.c.bf16 %v119_v15, %v112_v14  ;;  %v621_v9 = vld [vmem:[#allocation5 + $0x1230] sm:$0xff]  ;;  %v167_v14 = vld [vmem:[#allocation5 + $0x400] sm:$0xff]  ;;  %v174_v15 = vld [vmem:[#allocation5 + $0x438] sm:$0xff] }
  0x6a   :  { %1041 = vmatmul.mubr.f32.vlgmr.msra.gmra.mrb[0].mxu1 %v3389_v27  ;;  %v613_v13 = vld [vmem:[#allocation5 + $0x11f0] sm:$0xff]  ;;  %v2619_v25 = vpack.c.bf16 %v174_v15, %v167_v14  ;;  %v663_v52 = vld [vmem:[#allocation5 + $0x1380] sm:$0xff] }
  0x6b   :  { %1112 = vmatmul.mubr.f32.vlgmr.msra.gmra.mrb[0].mxu0 %v3392_v30  ;;  %2584 = vmatpush1.bf16.msra.mxu1 %v2583_v31  ;;  %v126_v31 = vld [vmem:[#allocation5 + $0x2b8] sm:$0xff]  ;;  %v2491_v26 = vpack.c.bf16 %v620_v17, %v613_v13  ;;  %v655_v56 = vld [vmem:[#allocation5 + $0x1340] sm:$0xff]  ;;  %v669_v5 = vld [vmem:[#allocation5 + $0x13b0] sm:$0xff] }
  0x6c   :  { %2456 = vmatpush1.bf16.msra.mxu0 %v2455_v32  ;;  %2586 = vmatprep.subr.bf16.mxu1 %v2585_v33  ;;  %v133_v32 = vld [vmem:[#allocation5 + $0x2f0] sm:$0xff]  ;;  %v572_v33 = vld [vmem:[#allocation5 + $0x10a8] sm:$0xff]  ;;  %v691_v13 = vld [vmem:[#allocation5 + $0x1460] sm:$0xff] }
  0x6d   :  { %2458 = vmatprep.subr.bf16.mxu0 %v2457_v37  ;;  %1182 = vmatprep.mubr.f32.mxu0 %v3395_v41  ;;  %v2605_v37 = vpack.c.bf16 %v133_v32, %v126_v31  ;;  %v2477_v42 = vpack.c.bf16 %v579_v34, %v572_v33  ;;  %v181_v31 = vld [vmem:[#allocation5 + $0x470] sm:$0xff]  ;;  %v188_v32 = vld [vmem:[#allocation5 + $0x4a8] sm:$0xff]  ;;  %v634_v34 = vld [vmem:[#allocation5 + $0x1298] sm:$0xff] }
  0x6e   :  { %1324 = vmatprep.mubr.f32.mxu1 %v3378_v23  ;;  %v2623_v39 = vpack.c.bf16 %v188_v32, %v181_v31  ;;  %v2495_v40 = vpack.c.bf16 %v634_v34, %v627_v29  ;;  %v683_v17 = vld [vmem:[#allocation5 + $0x1420] sm:$0xff]  ;;  %v705_v29 = vld [vmem:[#allocation5 + $0x14d0] sm:$0xff] }
  0x6f   :  { %2588 = vmatpush1.bf16.msra.mxu1 %v2587_v44  ;;  %v140_v44 = vld [vmem:[#allocation5 + $0x328] sm:$0xff]  ;;  %v697_v34 = vld [vmem:[#allocation5 + $0x1490] sm:$0xff] }
  0x70   :  { %2460 = vmatpush1.bf16.msra.mxu0 %v2459_v45  ;;  %2590 = vmatprep.subr.bf16.mxu1 %v2589_v47  ;;  %v147_v45 = vld [vmem:[#allocation5 + $0x360] sm:$0xff]  ;;  %v586_v47 = vld [vmem:[#allocation5 + $0x1118] sm:$0xff] }
  0x71   :  { %2462 = vmatprep.subr.bf16.mxu0 %v2461_v51  ;;  %v2609_v51 = vpack.c.bf16 %v147_v45, %v140_v44  ;;  %v2481_v55 = vpack.c.bf16 %v593_v48, %v586_v47  ;;  %v195_v44 = vld [vmem:[#allocation5 + $0x4e0] sm:$0xff]  ;;  %v202_v45 = vld [vmem:[#allocation5 + $0x518] sm:$0xff]  ;;  %v648_v48 = vld [vmem:[#allocation5 + $0x1308] sm:$0xff] }
  0x72   :  { %v2627_v53 = vpack.c.bf16 %v202_v45, %v195_v44  ;;  %v2499_v54 = vpack.c.bf16 %v648_v48, %v641_v43  ;;  %v719_v43 = vld [vmem:[#allocation5 + $0x1540] sm:$0xff]  ;;  %v954_v45 = vsub.s32 4, %v3371_v59 }
  0x73   :  { %2592 = vmatpush1.bf16.msra.mxu1 %v2591_v57  ;;  %v154_v57 = vld [vmem:[#allocation5 + $0x398] sm:$0xff] }
  0x74   :  { %2464 = vmatpush1.bf16.msra.mxu0 %v2463_v58  ;;  %2594 = vmatprep.subr.bf16.mxu1 %v2593_v60  ;;  %v161_v58 = vld [vmem:[#allocation5 + $0x3d0] sm:$0xff]  ;;  %v600_v60 = vld [vmem:[#allocation5 + $0x1188] sm:$0xff] }
  0x75   :  { %2466 = vmatprep.subr.bf16.mxu0 %v2465_v0  ;;  %v2613_v0 = vpack.c.bf16 %v161_v58, %v154_v57  ;;  %v2485_v4 = vpack.c.bf16 %v607_v61, %v600_v60  ;;  %v209_v57 = vld [vmem:[#allocation5 + $0x550] sm:$0xff]  ;;  %v216_v58 = vld [vmem:[#allocation5 + $0x588] sm:$0xff]  ;;  %v662_v61 = vld [vmem:[#allocation5 + $0x1378] sm:$0xff] }
  0x76   :  { %v2631_v2 = vpack.c.bf16 %v216_v58, %v209_v57  ;;  %v2503_v3 = vpack.c.bf16 %v662_v61, %v655_v56  ;;  %v966_v56 = vsub.s32 7, %v3371_v59  ;;  %v726_v57 = vld [vmem:[#allocation5 + $0x1578] sm:$0xff]  ;;  %v733_v58 = vld [vmem:[#allocation5 + $0x15b0] sm:$0xff] }
  0x77   :  { %2596 = vmatpush1.bf16.msra.mxu1 %v2595_v6  ;;  %v168_v6 = vld [vmem:[#allocation5 + $0x408] sm:$0xff] }
  0x78   :  { %2468 = vmatpush1.bf16.msra.mxu0 %v2467_v7  ;;  %2598 = vmatprep.subr.bf16.mxu1 %v2597_v8  ;;  %v175_v7 = vld [vmem:[#allocation5 + $0x440] sm:$0xff]  ;;  %v614_v8 = vld [vmem:[#allocation5 + $0x11f8] sm:$0xff] }
  0x79   :  { %2470 = vmatprep.subr.bf16.mxu0 %v2469_v12  ;;  %v2617_v12 = vpack.c.bf16 %v175_v7, %v168_v6  ;;  %v2489_v16 = vpack.c.bf16 %v621_v9, %v614_v8  ;;  %v223_v6 = vld [vmem:[#allocation5 + $0x5c0] sm:$0xff]  ;;  %v230_v7 = vld [vmem:[#allocation5 + $0x5f8] sm:$0xff]  ;;  %v676_v9 = vld [vmem:[#allocation5 + $0x13e8] sm:$0xff] }
  0x7a   :  { %v2635_v14 = vpack.c.bf16 %v230_v7, %v223_v6  ;;  %v2507_v15 = vpack.c.bf16 %v676_v9, %v669_v5  ;;  %v294_v5 = vld [vmem:[#allocation5 + $0x7f8] sm:$0xff]  ;;  %v301_v6 = vld [vmem:[#allocation5 + $0x830] sm:$0xff]  ;;  %v3407_v7 = vrot.slane %v3375_v20, %v966_v56  ;;  %v747_v9 = vld [vmem:[#allocation5 + $0x1620] sm:$0xff] }
  0x7b   :  { %2600 = vmatpush1.bf16.msra.mxu1 %v2599_v18  ;;  %v182_v18 = vld [vmem:[#allocation5 + $0x478] sm:$0xff]  ;;  %v335_v56 = vld [vmem:[#allocation5 + $0x940] sm:$0xff] }
  0x7c   :  { %2472 = vmatpush1.bf16.msra.mxu0 %v2471_v19  ;;  %2602 = vmatprep.subr.bf16.mxu1 %v2601_v21  ;;  %v189_v19 = vld [vmem:[#allocation5 + $0x4b0] sm:$0xff]  ;;  %v628_v21 = vld [vmem:[#allocation5 + $0x1268] sm:$0xff] }
  0x7d   :  { %2474 = vmatprep.subr.bf16.mxu0 %v2473_v28  ;;  %v2621_v28 = vpack.c.bf16 %v189_v19, %v182_v18  ;;  %v2493_v33 = vpack.c.bf16 %v635_v22, %v628_v21  ;;  %v237_v18 = vld [vmem:[#allocation5 + $0x630] sm:$0xff]  ;;  %v244_v19 = vld [vmem:[#allocation5 + $0x668] sm:$0xff]  ;;  %v690_v22 = vld [vmem:[#allocation5 + $0x1458] sm:$0xff] }
  0x7e   :  { %v2639_v31 = vpack.c.bf16 %v244_v19, %v237_v18  ;;  %v2511_v32 = vpack.c.bf16 %v690_v22, %v683_v17  ;;  %v746_v17 = vld [vmem:[#allocation5 + $0x1618] sm:$0xff]  ;;  %v315_v18 = vld [vmem:[#allocation5 + $0x8a0] sm:$0xff] }
  0x7f   :  { %2604 = vmatpush1.bf16.msra.mxu1 %v2603_v35  ;;  %v196_v35 = vld [vmem:[#allocation5 + $0x4e8] sm:$0xff]  ;;  %v754_v19 = vld [vmem:[#allocation5 + $0x1658] sm:$0xff] }
  0x80   :  { %2476 = vmatpush1.bf16.msra.mxu0 %v2475_v36  ;;  %2606 = vmatprep.subr.bf16.mxu1 %v2605_v37  ;;  %v203_v36 = vld [vmem:[#allocation5 + $0x520] sm:$0xff]  ;;  %v642_v37 = vld [vmem:[#allocation5 + $0x12d8] sm:$0xff] }
  0x81   :  { %2478 = vmatprep.subr.bf16.mxu0 %v2477_v42  ;;  %v2625_v42 = vpack.c.bf16 %v203_v36, %v196_v35  ;;  %v2497_v47 = vpack.c.bf16 %v649_v38, %v642_v37  ;;  %v251_v35 = vld [vmem:[#allocation5 + $0x6a0] sm:$0xff]  ;;  %v258_v36 = vld [vmem:[#allocation5 + $0x6d8] sm:$0xff]  ;;  %v704_v38 = vld [vmem:[#allocation5 + $0x14c8] sm:$0xff] }
  0x82   :  { %v2643_v44 = vpack.c.bf16 %v258_v36, %v251_v35  ;;  %v329_v35 = vld [vmem:[#allocation5 + $0x910] sm:$0xff]  ;;  %v768_v36 = vld [vmem:[#allocation5 + $0x16c8] sm:$0xff] }
  0x83   :  { %2608 = vmatpush1.bf16.msra.mxu1 %v2607_v49  ;;  %v210_v49 = vld [vmem:[#allocation5 + $0x558] sm:$0xff] }
  0x84   :  { %2480 = vmatpush1.bf16.msra.mxu0 %v2479_v50  ;;  %2610 = vmatprep.subr.bf16.mxu1 %v2609_v51  ;;  %v217_v50 = vld [vmem:[#allocation5 + $0x590] sm:$0xff]  ;;  %v656_v51 = vld [vmem:[#allocation5 + $0x1348] sm:$0xff] }
  0x85   :  { %2482 = vmatprep.subr.bf16.mxu0 %v2481_v55  ;;  %v2629_v55 = vpack.c.bf16 %v217_v50, %v210_v49  ;;  %v2501_v60 = vpack.c.bf16 %v663_v52, %v656_v51  ;;  %v711_v49 = vld [vmem:[#allocation5 + $0x1500] sm:$0xff]  ;;  %v265_v50 = vld [vmem:[#allocation5 + $0x710] sm:$0xff]  ;;  %v272_v51 = vld [vmem:[#allocation5 + $0x748] sm:$0xff] }
  0x86   :  { %v2647_v61 = vpack.c.bf16 %v272_v51, %v265_v50  ;;  %v782_v50 = vld [vmem:[#allocation5 + $0x1738] sm:$0xff]  ;;  %v789_v51 = vld [vmem:[#allocation5 + $0x1770] sm:$0xff] }
  0x87   :  { %2612 = vmatpush1.bf16.msra.mxu1 %v2611_v62  ;;  %v224_v62 = vld [vmem:[#allocation5 + $0x5c8] sm:$0xff] }
  0x88   :  { %2484 = vmatpush1.bf16.msra.mxu0 %v2483_v63  ;;  %2614 = vmatprep.subr.bf16.mxu1 %v2613_v0  ;;  %v231_v63 = vld [vmem:[#allocation5 + $0x600] sm:$0xff]  ;;  %v670_v0 = vld [vmem:[#allocation5 + $0x13b8] sm:$0xff] }
  0x89   :  { %2486 = vmatprep.subr.bf16.mxu0 %v2485_v4  ;;  %v2633_v4 = vpack.c.bf16 %v231_v63, %v224_v62  ;;  %v2505_v8 = vpack.c.bf16 %v677_v1, %v670_v0  ;;  %v725_v0 = vld [vmem:[#allocation5 + $0x1570] sm:$0xff]  ;;  %v279_v1 = vld [vmem:[#allocation5 + $0x780] sm:$0xff] }
  0x8b   :  { %2616 = vmatpush1.bf16.msra.mxu1 %v2615_v10  ;;  %v238_v10 = vld [vmem:[#allocation5 + $0x638] sm:$0xff] }
  0x8c   :  { %2488 = vmatpush1.bf16.msra.mxu0 %v2487_v11  ;;  %2618 = vmatprep.subr.bf16.mxu1 %v2617_v12  ;;  %v245_v11 = vld [vmem:[#allocation5 + $0x670] sm:$0xff]  ;;  %v684_v12 = vld [vmem:[#allocation5 + $0x1428] sm:$0xff] }
  0x8d   :  { %2490 = vmatprep.subr.bf16.mxu0 %v2489_v16  ;;  %v2637_v16 = vpack.c.bf16 %v245_v11, %v238_v10  ;;  %v2509_v21 = vpack.c.bf16 %v691_v13, %v684_v12  ;;  %v2653_v12 = vpack.c.bf16 %v301_v6, %v294_v5  ;;  %v739_v13 = vld [vmem:[#allocation5 + $0x15e0] sm:$0xff]  ;;  %v349_v6 = vld [vmem:[#allocation5 + $0x9b0] sm:$0xff] }
  0x8e   :  { %v795_v5 = vld [vmem:[#allocation5 + $0x17a0] sm:$0xff] }
  0x8f   :  { %2620 = vmatpush1.bf16.msra.mxu1 %v2619_v25  ;;  %v252_v25 = vld [vmem:[#allocation5 + $0x6a8] sm:$0xff] }
  0x90   :  { %2492 = vmatpush1.bf16.msra.mxu0 %v2491_v26  ;;  %2622 = vmatprep.subr.bf16.mxu1 %v2621_v28  ;;  %v259_v26 = vld [vmem:[#allocation5 + $0x6e0] sm:$0xff]  ;;  %v698_v28 = vld [vmem:[#allocation5 + $0x1498] sm:$0xff] }
  0x91   :  { %2494 = vmatprep.subr.bf16.mxu0 %v2493_v33  ;;  %v2641_v33 = vpack.c.bf16 %v259_v26, %v252_v25  ;;  %v2513_v37 = vpack.c.bf16 %v705_v29, %v698_v28  ;;  %v2527_v25 = vpack.c.bf16 %v746_v17, %v739_v13  ;;  %v753_v28 = vld [vmem:[#allocation5 + $0x1650] sm:$0xff]  ;;  %v307_v29 = vld [vmem:[#allocation5 + $0x860] sm:$0xff]  ;;  %v810_v13 = vld [vmem:[#allocation5 + $0x1818] sm:$0xff] }
  0x93   :  { %2624 = vmatpush1.bf16.msra.mxu1 %v2623_v39  ;;  %v266_v39 = vld [vmem:[#allocation5 + $0x718] sm:$0xff] }
  0x94   :  { %2496 = vmatpush1.bf16.msra.mxu0 %v2495_v40  ;;  %2626 = vmatprep.subr.bf16.mxu1 %v2625_v42  ;;  %v273_v40 = vld [vmem:[#allocation5 + $0x750] sm:$0xff]  ;;  %v712_v42 = vld [vmem:[#allocation5 + $0x1508] sm:$0xff] }
  0x95   :  { %2498 = vmatprep.subr.bf16.mxu0 %v2497_v47  ;;  %v2515_v47 = vpack.c.bf16 %v704_v38, %v697_v34  ;;  %v2645_v48 = vpack.c.bf16 %v273_v40, %v266_v39  ;;  %v2517_v52 = vpack.c.bf16 %v719_v43, %v712_v42  ;;  %v322_v34 = vld [vmem:[#allocation5 + $0x8d8] sm:$0xff]  ;;  %v767_v42 = vld [vmem:[#allocation5 + $0x16c0] sm:$0xff]  ;;  %v321_v43 = vld [vmem:[#allocation5 + $0x8d0] sm:$0xff] }
  0x96   :  { %v2661_v40 = vpack.c.bf16 %v329_v35, %v322_v34  ;;  %v823_v34 = vld [vmem:[#allocation5 + $0x1880] sm:$0xff]  ;;  %v377_v35 = vld [vmem:[#allocation5 + $0xa90] sm:$0xff] }
  0x97   :  { %2628 = vmatpush1.bf16.msra.mxu1 %v2627_v53  ;;  %v718_v53 = vld [vmem:[#allocation5 + $0x1538] sm:$0xff] }
  0x98   :  { %2500 = vmatpush1.bf16.msra.mxu0 %v2499_v54  ;;  %2630 = vmatprep.subr.bf16.mxu1 %v2629_v55  ;;  %v280_v54 = vld [vmem:[#allocation5 + $0x788] sm:$0xff]  ;;  %v287_v55 = vld [vmem:[#allocation5 + $0x7c0] sm:$0xff]  ;;  %v2519_v62 = vpack.c.bf16 %v718_v53, %v711_v49 }
  0x99   :  { %2502 = vmatprep.subr.bf16.mxu0 %v2501_v60  ;;  %v3404_v60 = vrot.slane %v3375_v20, %v954_v45  ;;  %v2649_v63 = vpack.c.bf16 %v287_v55, %v280_v54  ;;  %v308_v20 = vld [vmem:[#allocation5 + $0x868] sm:$0xff]  ;;  %v343_v49 = vld [vmem:[#allocation5 + $0x980] sm:$0xff]  ;;  %v781_v55 = vld [vmem:[#allocation5 + $0x1730] sm:$0xff] }
  0x9a   :  { %v2657_v26 = vpack.c.bf16 %v315_v18, %v308_v20  ;;  %v809_v20 = vld [vmem:[#allocation5 + $0x1810] sm:$0xff]  ;;  %v363_v18 = vld [vmem:[#allocation5 + $0xa20] sm:$0xff] }
  0x9b   :  { %2632 = vmatpush1.bf16.msra.mxu1 %v2631_v2  ;;  %v286_v2 = vld [vmem:[#allocation5 + $0x7b8] sm:$0xff] }
  0x9c   :  { %2504 = vmatpush1.bf16.msra.mxu0 %v2503_v3  ;;  %2634 = vmatprep.subr.bf16.mxu1 %v2633_v4  ;;  %v2521_v3 = vpack.c.bf16 %v733_v58, %v726_v57  ;;  %v732_v4 = vld [vmem:[#allocation5 + $0x15a8] sm:$0xff]  ;;  %v2651_v10 = vpack.c.bf16 %v286_v2, %v279_v1  ;;  %v342_v57 = vld [vmem:[#allocation5 + $0x978] sm:$0xff]  ;;  %v2537_v58 = vpack.c.bf16 %v789_v51, %v782_v50  ;;  %v803_v1 = vld [vmem:[#allocation5 + $0x17e0] sm:$0xff] }
  0x9d   :  { %2506 = vmatprep.subr.bf16.mxu0 %v2505_v8  ;;  %v740_v8 = vld [vmem:[#allocation5 + $0x15e8] sm:$0xff]  ;;  %v2523_v11 = vpack.c.bf16 %v732_v4, %v725_v0  ;;  %v2667_v2 = vpack.c.bf16 %v342_v57, %v335_v56  ;;  %v398_v50 = vld [vmem:[#allocation5 + $0xb38] sm:$0xff]  ;;  %v859_v56 = vld [vmem:[#allocation5 + $0x19a0] sm:$0xff] }
  0x9e   :  { %v796_v0 = vld [vmem:[#allocation5 + $0x17a8] sm:$0xff] }
  0x9f   :  { %2636 = vmatpush1.bf16.msra.mxu1 %v2635_v14  ;;  %v293_v14 = vld [vmem:[#allocation5 + $0x7f0] sm:$0xff] }
  0xa0   :  { %2508 = vmatpush1.bf16.msra.mxu0 %v2507_v15  ;;  %2638 = vmatprep.subr.bf16.mxu1 %v2637_v16  ;;  %v300_v15 = vld [vmem:[#allocation5 + $0x828] sm:$0xff]  ;;  %v2525_v16 = vpack.c.bf16 %v747_v9, %v740_v8  ;;  %v2541_v9 = vpack.c.bf16 %v803_v1, %v796_v0 }
  0xa1   :  { %2510 = vmatprep.subr.bf16.mxu0 %v2509_v21  ;;  %v761_v21 = vld [vmem:[#allocation5 + $0x1690] sm:$0xff]  ;;  %v2655_v22 = vpack.c.bf16 %v300_v15, %v293_v14  ;;  %v356_v8 = vld [vmem:[#allocation5 + $0x9e8] sm:$0xff] }
  0xa2   :  { %v817_v14 = vld [vmem:[#allocation5 + $0x1850] sm:$0xff]  ;;  %v2671_v15 = vpack.c.bf16 %v356_v8, %v349_v6  ;;  %v412_v0 = vld [vmem:[#allocation5 + $0xba8] sm:$0xff] }
  0xa3   :  { %2640 = vmatpush1.bf16.msra.mxu1 %v2639_v31  ;;  %v314_v31 = vld [vmem:[#allocation5 + $0x898] sm:$0xff]  ;;  %v873_v6 = vld [vmem:[#allocation5 + $0x1a10] sm:$0xff] }
  0xa4   :  { %2512 = vmatpush1.bf16.msra.mxu0 %v2511_v32  ;;  %2642 = vmatprep.subr.bf16.mxu1 %v2641_v33  ;;  %v2529_v32 = vpack.c.bf16 %v761_v21, %v754_v19  ;;  %v760_v33 = vld [vmem:[#allocation5 + $0x1688] sm:$0xff]  ;;  %v2659_v38 = vpack.c.bf16 %v314_v31, %v307_v29  ;;  %v370_v19 = vld [vmem:[#allocation5 + $0xa58] sm:$0xff]  ;;  %v2545_v21 = vpack.c.bf16 %v817_v14, %v810_v13  ;;  %v831_v29 = vld [vmem:[#allocation5 + $0x18c0] sm:$0xff] }
  0xa5   :  { %2514 = vmatprep.subr.bf16.mxu0 %v2513_v37  ;;  %v775_v37 = vld [vmem:[#allocation5 + $0x1700] sm:$0xff]  ;;  %v2531_v39 = vpack.c.bf16 %v760_v33, %v753_v28  ;;  %v824_v28 = vld [vmem:[#allocation5 + $0x1888] sm:$0xff]  ;;  %v2675_v31 = vpack.c.bf16 %v370_v19, %v363_v18  ;;  %v426_v13 = vld [vmem:[#allocation5 + $0xc18] sm:$0xff] }
  0xa6   :  { %v2533_v45 = vpack.c.bf16 %v775_v37, %v768_v36  ;;  %v384_v36 = vld [vmem:[#allocation5 + $0xac8] sm:$0xff]  ;;  %v2549_v37 = vpack.c.bf16 %v831_v29, %v824_v28  ;;  %v887_v18 = vld [vmem:[#allocation5 + $0x1a80] sm:$0xff] }
  0xa7   :  { %2644 = vmatpush1.bf16.msra.mxu1 %v2643_v44  ;;  %v328_v44 = vld [vmem:[#allocation5 + $0x908] sm:$0xff] }
  0xa8   :  { %2516 = vmatpush1.bf16.msra.mxu0 %v2515_v47  ;;  %2646 = vmatprep.subr.bf16.mxu1 %v2645_v48  ;;  %v774_v47 = vld [vmem:[#allocation5 + $0x16f8] sm:$0xff]  ;;  %v336_v48 = vld [vmem:[#allocation5 + $0x948] sm:$0xff] }
  0xa9   :  { %2518 = vmatprep.subr.bf16.mxu0 %v2517_v52  ;;  %v2663_v52 = vpack.c.bf16 %v328_v44, %v321_v43  ;;  %v2535_v53 = vpack.c.bf16 %v774_v47, %v767_v42  ;;  %v2665_v54 = vpack.c.bf16 %v343_v49, %v336_v48  ;;  %v838_v42 = vld [vmem:[#allocation5 + $0x18f8] sm:$0xff]  ;;  %v845_v43 = vld [vmem:[#allocation5 + $0x1930] sm:$0xff]  ;;  %v2679_v44 = vpack.c.bf16 %v384_v36, %v377_v35  ;;  %v391_v49 = vld [vmem:[#allocation5 + $0xb00] sm:$0xff] }
  0xaa   :  { %1325 = vmatmul.mubr.f32.vlgmr.msra.gmra.mrb[2].mxu1 %v3389_v27  ;;  %v837_v48 = vld [vmem:[#allocation5 + $0x18f0] sm:$0xff]  ;;  %v2553_v51 = vpack.c.bf16 %v845_v43, %v838_v42  ;;  %v2683_v57 = vpack.c.bf16 %v398_v50, %v391_v49  ;;  %v440_v28 = vld [vmem:[#allocation5 + $0xc88] sm:$0xff]  ;;  %v454_v42 = vld [vmem:[#allocation5 + $0xcf8] sm:$0xff] }
  0xab   :  { %1183 = vmatmul.mubr.f32.vlgmr.msra.gmra.mrb[0].mxu0 %v3404_v60  ;;  %2648 = vmatpush1.bf16.msra.mxu1 %v2647_v61  ;;  %v788_v61 = vld [vmem:[#allocation5 + $0x1768] sm:$0xff]  ;;  %v901_v35 = vld [vmem:[#allocation5 + $0x1af0] sm:$0xff]  ;;  %v915_v49 = vld [vmem:[#allocation5 + $0x1b60] sm:$0xff] }
  0xac   :  { %2520 = vmatpush1.bf16.msra.mxu0 %v2519_v62  ;;  %2650 = vmatprep.subr.bf16.mxu1 %v2649_v63  ;;  %v350_v62 = vld [vmem:[#allocation5 + $0x9b8] sm:$0xff]  ;;  %v357_v63 = vld [vmem:[#allocation5 + $0x9f0] sm:$0xff] }
  0xad   :  { %2522 = vmatprep.subr.bf16.mxu0 %v2521_v3  ;;  %1253 = vmatprep.mubr.f32.mxu0 %v3407_v7  ;;  %v2539_v3 = vpack.c.bf16 %v788_v61, %v781_v55  ;;  %v2669_v4 = vpack.c.bf16 %v357_v63, %v350_v62  ;;  %v852_v55 = vld [vmem:[#allocation5 + $0x1968] sm:$0xff]  ;;  %v851_v62 = vld [vmem:[#allocation5 + $0x1960] sm:$0xff]  ;;  %v405_v63 = vld [vmem:[#allocation5 + $0xb70] sm:$0xff] }
  0xae   :  { %1395 = vmatprep.mubr.f32.mxu1 %v3381_v24  ;;  %v2557_v1 = vpack.c.bf16 %v859_v56, %v852_v55  ;;  %v2687_v8 = vpack.c.bf16 %v412_v0, %v405_v63  ;;  %v468_v55 = vld [vmem:[#allocation5 + $0xd68] sm:$0xff]  ;;  %v929_v63 = vld [vmem:[#allocation5 + $0x1bd0] sm:$0xff] }
  0xaf   :  { %2652 = vmatpush1.bf16.msra.mxu1 %v2651_v10  ;;  %v802_v10 = vld [vmem:[#allocation5 + $0x17d8] sm:$0xff] }
  0xb0   :  { %2524 = vmatpush1.bf16.msra.mxu0 %v2523_v11  ;;  %2654 = vmatprep.subr.bf16.mxu1 %v2653_v12  ;;  %v364_v11 = vld [vmem:[#allocation5 + $0xa28] sm:$0xff]  ;;  %v371_v12 = vld [vmem:[#allocation5 + $0xa60] sm:$0xff] }
  0xb1   :  { %2526 = vmatprep.subr.bf16.mxu0 %v2525_v16  ;;  %v2543_v16 = vpack.c.bf16 %v802_v10, %v795_v5  ;;  %v2673_v17 = vpack.c.bf16 %v371_v12, %v364_v11  ;;  %v866_v5 = vld [vmem:[#allocation5 + $0x19d8] sm:$0xff]  ;;  %v865_v11 = vld [vmem:[#allocation5 + $0x19d0] sm:$0xff]  ;;  %v419_v12 = vld [vmem:[#allocation5 + $0xbe0] sm:$0xff] }
  0xb2   :  { %v2561_v14 = vpack.c.bf16 %v873_v6, %v866_v5  ;;  %v2691_v19 = vpack.c.bf16 %v426_v13, %v419_v12  ;;  %v482_v5 = vld [vmem:[#allocation5 + $0xdd8] sm:$0xff]  ;;  %v51_v12 = vld [vmem:[#allocation5 + $0x60] sm:$0xff] }
  0xb3   :  { %2656 = vmatpush1.bf16.msra.mxu1 %v2655_v22  ;;  %v816_v22 = vld [vmem:[#allocation5 + $0x1848] sm:$0xff] }
  0xb4   :  { %2528 = vmatpush1.bf16.msra.mxu0 %v2527_v25  ;;  %2658 = vmatprep.subr.bf16.mxu1 %v2657_v26  ;;  %v378_v25 = vld [vmem:[#allocation5 + $0xa98] sm:$0xff]  ;;  %v385_v26 = vld [vmem:[#allocation5 + $0xad0] sm:$0xff] }
  0xb5   :  { %2530 = vmatprep.subr.bf16.mxu0 %v2529_v32  ;;  %v2547_v32 = vpack.c.bf16 %v816_v22, %v809_v20  ;;  %v2677_v33 = vpack.c.bf16 %v385_v26, %v378_v25  ;;  %v880_v20 = vld [vmem:[#allocation5 + $0x1a48] sm:$0xff]  ;;  %v879_v25 = vld [vmem:[#allocation5 + $0x1a40] sm:$0xff]  ;;  %v433_v26 = vld [vmem:[#allocation5 + $0xc50] sm:$0xff] }
  0xb6   :  { %v2565_v29 = vpack.c.bf16 %v887_v18, %v880_v20  ;;  %v2695_v36 = vpack.c.bf16 %v440_v28, %v433_v26  ;;  %v496_v20 = vld [vmem:[#allocation5 + $0xe48] sm:$0xff]  ;;  %v43_v18 = vld [vmem:[#allocation5 + $0x20] sm:$0xff]  ;;  %v58_v26 = vld [vmem:[#allocation5 + $0x98] sm:$0xff] }
  0xb7   :  { %2660 = vmatpush1.bf16.msra.mxu1 %v2659_v38  ;;  %v830_v38 = vld [vmem:[#allocation5 + $0x18b8] sm:$0xff]  ;;  %v65_v28 = vld [vmem:[#allocation5 + $0xd0] sm:$0xff] }
  0xb8   :  { %2532 = vmatpush1.bf16.msra.mxu0 %v2531_v39  ;;  %2662 = vmatprep.subr.bf16.mxu1 %v2661_v40  ;;  %v392_v39 = vld [vmem:[#allocation5 + $0xb08] sm:$0xff]  ;;  %v399_v40 = vld [vmem:[#allocation5 + $0xb40] sm:$0xff] }
  0xb9   :  { %2534 = vmatprep.subr.bf16.mxu0 %v2533_v45  ;;  %v2551_v45 = vpack.c.bf16 %v830_v38, %v823_v34  ;;  %v2681_v47 = vpack.c.bf16 %v399_v40, %v392_v39  ;;  %v894_v34 = vld [vmem:[#allocation5 + $0x1ab8] sm:$0xff]  ;;  %v893_v39 = vld [vmem:[#allocation5 + $0x1ab0] sm:$0xff]  ;;  %v447_v40 = vld [vmem:[#allocation5 + $0xcc0] sm:$0xff] }
  0xba   :  { %v2569_v43 = vpack.c.bf16 %v901_v35, %v894_v34  ;;  %v2699_v50 = vpack.c.bf16 %v454_v42, %v447_v40  ;;  %v503_v35 = vld [vmem:[#allocation5 + $0xe80] sm:$0xff]  ;;  %v518_v40 = vld [vmem:[#allocation5 + $0xef8] sm:$0xff]  ;;  %v525_v42 = vld [vmem:[#allocation5 + $0xf30] sm:$0xff] }
  0xbb   :  { %2664 = vmatpush1.bf16.msra.mxu1 %v2663_v52  ;;  %v844_v52 = vld [vmem:[#allocation5 + $0x1928] sm:$0xff] }
  0xbc   :  { %2536 = vmatpush1.bf16.msra.mxu0 %v2535_v53  ;;  %2666 = vmatprep.subr.bf16.mxu1 %v2665_v54  ;;  %v406_v53 = vld [vmem:[#allocation5 + $0xb78] sm:$0xff]  ;;  %v413_v54 = vld [vmem:[#allocation5 + $0xbb0] sm:$0xff] }
  0xbd   :  { %2538 = vmatprep.subr.bf16.mxu0 %v2537_v58  ;;  %v2555_v58 = vpack.c.bf16 %v844_v52, %v837_v48  ;;  %v2685_v61 = vpack.c.bf16 %v413_v54, %v406_v53  ;;  %v908_v48 = vld [vmem:[#allocation5 + $0x1b28] sm:$0xff]  ;;  %v907_v53 = vld [vmem:[#allocation5 + $0x1b20] sm:$0xff]  ;;  %v461_v54 = vld [vmem:[#allocation5 + $0xd30] sm:$0xff] }
  0xbe   :  { %v2573_v56 = vpack.c.bf16 %v915_v49, %v908_v48  ;;  %v2703_v0 = vpack.c.bf16 %v468_v55, %v461_v54  ;;  %v2717_v48 = vpack.c.bf16 %v525_v42, %v518_v40  ;;  %v517_v49 = vld [vmem:[#allocation5 + $0xef0] sm:$0xff]  ;;  %v532_v54 = vld [vmem:[#allocation5 + $0xf68] sm:$0xff]  ;;  %v539_v55 = vld [vmem:[#allocation5 + $0xfa0] sm:$0xff] }
  0xbf   :  { %2668 = vmatpush1.bf16.msra.mxu1 %v2667_v2  ;;  %v858_v2 = vld [vmem:[#allocation5 + $0x1998] sm:$0xff]  ;;  %v573_v42 = vld [vmem:[#allocation5 + $0x10b0] sm:$0xff] }
  0xc0   :  { %2540 = vmatpush1.bf16.msra.mxu0 %v2539_v3  ;;  %2670 = vmatprep.subr.bf16.mxu1 %v2669_v4  ;;  %v420_v3 = vld [vmem:[#allocation5 + $0xbe8] sm:$0xff]  ;;  %v427_v4 = vld [vmem:[#allocation5 + $0xc20] sm:$0xff] }
  0xc1   :  { %2542 = vmatprep.subr.bf16.mxu0 %v2541_v9  ;;  %v2559_v9 = vpack.c.bf16 %v858_v2, %v851_v62  ;;  %v2689_v10 = vpack.c.bf16 %v427_v4, %v420_v3  ;;  %v922_v62 = vld [vmem:[#allocation5 + $0x1b98] sm:$0xff]  ;;  %v921_v3 = vld [vmem:[#allocation5 + $0x1b90] sm:$0xff]  ;;  %v475_v4 = vld [vmem:[#allocation5 + $0xda0] sm:$0xff] }
  0xc2   :  { %v2577_v6 = vpack.c.bf16 %v929_v63, %v922_v62  ;;  %v2707_v13 = vpack.c.bf16 %v482_v5, %v475_v4  ;;  %v2721_v62 = vpack.c.bf16 %v539_v55, %v532_v54  ;;  %v531_v63 = vld [vmem:[#allocation5 + $0xf60] sm:$0xff]  ;;  %v546_v4 = vld [vmem:[#allocation5 + $0xfd8] sm:$0xff]  ;;  %v553_v5 = vld [vmem:[#allocation5 + $0x1010] sm:$0xff] }
  0xc3   :  { %2672 = vmatpush1.bf16.msra.mxu1 %v2671_v15  ;;  %v872_v15 = vld [vmem:[#allocation5 + $0x1a08] sm:$0xff]  ;;  %v587_v55 = vld [vmem:[#allocation5 + $0x1120] sm:$0xff] }
  0xc4   :  { %2544 = vmatpush1.bf16.msra.mxu0 %v2543_v16  ;;  %2674 = vmatprep.subr.bf16.mxu1 %v2673_v17  ;;  %v434_v16 = vld [vmem:[#allocation5 + $0xc58] sm:$0xff]  ;;  %v441_v17 = vld [vmem:[#allocation5 + $0xc90] sm:$0xff] }
  0xc5   :  { %2546 = vmatprep.subr.bf16.mxu0 %v2545_v21  ;;  %v2563_v21 = vpack.c.bf16 %v872_v15, %v865_v11  ;;  %v2693_v22 = vpack.c.bf16 %v441_v17, %v434_v16  ;;  %v44_v11 = vld [vmem:[#allocation5 + $0x28] sm:$0xff]  ;;  %v489_v17 = vld [vmem:[#allocation5 + $0xe10] sm:$0xff] }
  0xc7   :  { %2676 = vmatpush1.bf16.msra.mxu1 %v2675_v31  ;;  %v886_v31 = vld [vmem:[#allocation5 + $0x1a78] sm:$0xff] }
  0xc8   :  { %2548 = vmatpush1.bf16.msra.mxu0 %v2547_v32  ;;  %2678 = vmatprep.subr.bf16.mxu1 %v2677_v33  ;;  %v448_v32 = vld [vmem:[#allocation5 + $0xcc8] sm:$0xff]  ;;  %v455_v33 = vld [vmem:[#allocation5 + $0xd00] sm:$0xff] }
  0xc9   :  { %2550 = vmatprep.subr.bf16.mxu0 %v2549_v37  ;;  %v2567_v37 = vpack.c.bf16 %v886_v31, %v879_v25  ;;  %v2697_v38 = vpack.c.bf16 %v455_v33, %v448_v32  ;;  %v511_v25 = vld [vmem:[#allocation5 + $0xec0] sm:$0xff]  ;;  %v2711_v32 = vpack.c.bf16 %v496_v20, %v489_v17  ;;  %v560_v17 = vld [vmem:[#allocation5 + $0x1048] sm:$0xff] }
  0xca   :  { %v567_v20 = vld [vmem:[#allocation5 + $0x1080] sm:$0xff] }
  0xcb   :  { %2680 = vmatpush1.bf16.msra.mxu1 %v2679_v44  ;;  %v900_v44 = vld [vmem:[#allocation5 + $0x1ae8] sm:$0xff] }
  0xcc   :  { %2552 = vmatpush1.bf16.msra.mxu0 %v2551_v45  ;;  %2682 = vmatprep.subr.bf16.mxu1 %v2681_v47  ;;  %v462_v45 = vld [vmem:[#allocation5 + $0xd38] sm:$0xff]  ;;  %v469_v47 = vld [vmem:[#allocation5 + $0xd70] sm:$0xff] }
  0xcd   :  { %2554 = vmatprep.subr.bf16.mxu0 %v2553_v51  ;;  %v2571_v51 = vpack.c.bf16 %v900_v44, %v893_v39  ;;  %v2701_v52 = vpack.c.bf16 %v469_v47, %v462_v45  ;;  %v64_v39 = vld [vmem:[#allocation5 + $0xc8] sm:$0xff]  ;;  %v79_v44 = vld [vmem:[#allocation5 + $0x140] sm:$0xff] }
  0xcf   :  { %2684 = vmatpush1.bf16.msra.mxu1 %v2683_v57  ;;  %v914_v57 = vld [vmem:[#allocation5 + $0x1b58] sm:$0xff] }
  0xd0   :  { %2556 = vmatpush1.bf16.msra.mxu0 %v2555_v58  ;;  %2686 = vmatprep.subr.bf16.mxu1 %v2685_v61  ;;  %v476_v58 = vld [vmem:[#allocation5 + $0xda8] sm:$0xff]  ;;  %v483_v61 = vld [vmem:[#allocation5 + $0xde0] sm:$0xff] }
  0xd1   :  { %2558 = vmatprep.subr.bf16.mxu0 %v2557_v1  ;;  %v2575_v1 = vpack.c.bf16 %v914_v57, %v907_v53  ;;  %v2705_v2 = vpack.c.bf16 %v483_v61, %v476_v58  ;;  %v78_v53 = vld [vmem:[#allocation5 + $0x138] sm:$0xff]  ;;  %v93_v57 = vld [vmem:[#allocation5 + $0x1b0] sm:$0xff] }
  0xd3   :  { %2688 = vmatpush1.bf16.msra.mxu1 %v2687_v8  ;;  %v928_v8 = vld [vmem:[#allocation5 + $0x1bc8] sm:$0xff] }
  0xd4   :  { %2560 = vmatpush1.bf16.msra.mxu0 %v2559_v9  ;;  %2690 = vmatprep.subr.bf16.mxu1 %v2689_v10  ;;  %v490_v9 = vld [vmem:[#allocation5 + $0xe18] sm:$0xff]  ;;  %v497_v10 = vld [vmem:[#allocation5 + $0xe50] sm:$0xff]  ;;  %v2579_v15 = vpack.c.bf16 %v928_v8, %v921_v3  ;;  %v92_v3 = vld [vmem:[#allocation5 + $0x1a8] sm:$0xff] }
  0xd5   :  { %2562 = vmatprep.subr.bf16.mxu0 %v2561_v14  ;;  %v962_v14 = vsub.s32 6, %v3371_v59  ;;  %v2709_v16 = vpack.c.bf16 %v497_v10, %v490_v9  ;;  %v107_v8 = vld [vmem:[#allocation5 + $0x220] sm:$0xff] }
  0xd7   :  { %2692 = vmatpush1.bf16.msra.mxu1 %v2691_v19  ;;  %v2837_v19 = vpack.c.bf16 %v51_v12, %v44_v11  ;;  %v2725_v11 = vpack.c.bf16 %v553_v5, %v546_v4  ;;  %v545_v12 = vld [vmem:[#allocation5 + $0xfd0] sm:$0xff] }
  0xd8   :  { %2564 = vmatpush1.bf16.msra.mxu0 %v2563_v21  ;;  %2694 = vmatprep.subr.bf16.mxu1 %v2693_v22  ;;  %v50_v21 = vld [vmem:[#allocation5 + $0x58] sm:$0xff]  ;;  %v504_v22 = vld [vmem:[#allocation5 + $0xe88] sm:$0xff]  ;;  %v601_v5 = vld [vmem:[#allocation5 + $0x1190] sm:$0xff] }
  0xd9   :  { %2566 = vmatprep.subr.bf16.mxu0 %v2565_v29  ;;  %v3245_v29 = vld [vmem:[#allocation2] sm:$0xff]  ;;  %v2839_v33 = vpack.c.bf16 %v50_v21, %v43_v18  ;;  %v2713_v34 = vpack.c.bf16 %v511_v25, %v504_v22  ;;  %v2729_v25 = vpack.c.bf16 %v567_v20, %v560_v17  ;;  %v615_v20 = vld [vmem:[#allocation5 + $0x1200] sm:$0xff] }
  0xda   :  { %v3414_v31 = vrot.slane %v3245_v29, %v962_v14  ;;  %v99_v14 = vld [vmem:[#allocation5 + $0x1e0] sm:$0xff]  ;;  %v114_v18 = vld [vmem:[#allocation5 + $0x258] sm:$0xff]  ;;  %v113_v29 = vld [vmem:[#allocation5 + $0x250] sm:$0xff] }
  0xdb   :  { %2696 = vmatpush1.bf16.msra.mxu1 %v2695_v36  ;;  %v510_v36 = vld [vmem:[#allocation5 + $0xeb8] sm:$0xff] }
  0xdc   :  { %2568 = vmatpush1.bf16.msra.mxu0 %v2567_v37  ;;  %2698 = vmatprep.subr.bf16.mxu1 %v2697_v38  ;;  %v57_v37 = vld [vmem:[#allocation5 + $0x90] sm:$0xff]  ;;  %v2841_v38 = vpack.c.bf16 %v65_v28, %v58_v26  ;;  %v2715_v45 = vpack.c.bf16 %v510_v36, %v503_v35  ;;  %v559_v26 = vld [vmem:[#allocation5 + $0x1040] sm:$0xff]  ;;  %v566_v28 = vld [vmem:[#allocation5 + $0x1078] sm:$0xff] }
  0xdd   :  { %2570 = vmatprep.subr.bf16.mxu0 %v2569_v43  ;;  %v72_v43 = vld [vmem:[#allocation5 + $0x108] sm:$0xff]  ;;  %v2843_v47 = vpack.c.bf16 %v64_v39, %v57_v37  ;;  %v581_v35 = vld [vmem:[#allocation5 + $0x10f0] sm:$0xff]  ;;  %v135_v37 = vld [vmem:[#allocation5 + $0x300] sm:$0xff] }
  0xde   :  { %v128_v36 = vld [vmem:[#allocation5 + $0x2c8] sm:$0xff] }
  0xdf   :  { %2700 = vmatpush1.bf16.msra.mxu1 %v2699_v50  ;;  %v524_v50 = vld [vmem:[#allocation5 + $0xf28] sm:$0xff] }
  0xe0   :  { %2572 = vmatpush1.bf16.msra.mxu0 %v2571_v51  ;;  %2702 = vmatprep.subr.bf16.mxu1 %v2701_v52  ;;  %v71_v51 = vld [vmem:[#allocation5 + $0x100] sm:$0xff]  ;;  %v2845_v52 = vpack.c.bf16 %v79_v44, %v72_v43  ;;  %v2719_v58 = vpack.c.bf16 %v524_v50, %v517_v49  ;;  %v580_v43 = vld [vmem:[#allocation5 + $0x10e8] sm:$0xff]  ;;  %v142_v50 = vld [vmem:[#allocation5 + $0x338] sm:$0xff] }
  0xe1   :  { %2574 = vmatprep.subr.bf16.mxu0 %v2573_v56  ;;  %v86_v56 = vld [vmem:[#allocation5 + $0x178] sm:$0xff]  ;;  %v2847_v61 = vpack.c.bf16 %v78_v53, %v71_v51  ;;  %v127_v44 = vld [vmem:[#allocation5 + $0x2c0] sm:$0xff]  ;;  %v149_v51 = vld [vmem:[#allocation5 + $0x370] sm:$0xff] }
  0xe2   :  { %v595_v49 = vld [vmem:[#allocation5 + $0x1160] sm:$0xff] }
  0xe3   :  { %2704 = vmatpush1.bf16.msra.mxu1 %v2703_v0  ;;  %v538_v0 = vld [vmem:[#allocation5 + $0xf98] sm:$0xff] }
  0xe4   :  { %2576 = vmatpush1.bf16.msra.mxu0 %v2575_v1  ;;  %2706 = vmatprep.subr.bf16.mxu1 %v2705_v2  ;;  %v85_v1 = vld [vmem:[#allocation5 + $0x170] sm:$0xff]  ;;  %v2849_v2 = vpack.c.bf16 %v93_v57, %v86_v56  ;;  %v2723_v9 = vpack.c.bf16 %v538_v0, %v531_v63  ;;  %v594_v56 = vld [vmem:[#allocation5 + $0x1158] sm:$0xff]  ;;  %v156_v0 = vld [vmem:[#allocation5 + $0x3a8] sm:$0xff] }
  0xe5   :  { %2578 = vmatprep.subr.bf16.mxu0 %v2577_v6  ;;  %v100_v6 = vld [vmem:[#allocation5 + $0x1e8] sm:$0xff]  ;;  %v2851_v10 = vpack.c.bf16 %v92_v3, %v85_v1  ;;  %v141_v57 = vld [vmem:[#allocation5 + $0x330] sm:$0xff]  ;;  %v163_v1 = vld [vmem:[#allocation5 + $0x3e0] sm:$0xff] }
  0xe6   :  { %v609_v63 = vld [vmem:[#allocation5 + $0x11d0] sm:$0xff] }
  0xe7   :  { %2708 = vmatpush1.bf16.msra.mxu1 %v2707_v13  ;;  %v552_v13 = vld [vmem:[#allocation5 + $0x1008] sm:$0xff] }
  0xe8   :  { %2580 = vmatpush1.bf16.msra.mxu0 %v2579_v15  ;;  %2710 = vmatprep.subr.bf16.mxu1 %v2709_v16  ;;  %v2853_v15 = vpack.c.bf16 %v107_v8, %v100_v6  ;;  %v106_v16 = vld [vmem:[#allocation5 + $0x218] sm:$0xff]  ;;  %v2727_v21 = vpack.c.bf16 %v552_v13, %v545_v12  ;;  %v608_v6 = vld [vmem:[#allocation5 + $0x11c8] sm:$0xff]  ;;  %v155_v8 = vld [vmem:[#allocation5 + $0x3a0] sm:$0xff] }
  0xe9   :  { %2838 = vmatprep.subr.bf16.mxu0 %v2837_v19  ;;  %v121_v19 = vld [vmem:[#allocation5 + $0x290] sm:$0xff]  ;;  %v2855_v22 = vpack.c.bf16 %v106_v16, %v99_v14  ;;  %v623_v12 = vld [vmem:[#allocation5 + $0x1240] sm:$0xff]  ;;  %v170_v13 = vld [vmem:[#allocation5 + $0x418] sm:$0xff] }
  0xea   :  { %1396 = vmatmul.mubr.f32.vlgmr.msra.gmra.mrb[2].mxu1 %v3392_v30  ;;  %v177_v14 = vld [vmem:[#allocation5 + $0x450] sm:$0xff] }
  0xeb   :  { %1254 = vmatmul.mubr.f32.vlgmr.msra.gmra.mrb[0].mxu0 %v3414_v31  ;;  %2712 = vmatpush1.bf16.msra.mxu1 %v2711_v32  ;;  %v2857_v32 = vpack.c.bf16 %v121_v19, %v114_v18  ;;  %v622_v18 = vld [vmem:[#allocation5 + $0x1238] sm:$0xff]  ;;  %v169_v19 = vld [vmem:[#allocation5 + $0x410] sm:$0xff] }
  0xec   :  { %2840 = vmatpush1.bf16.msra.mxu0 %v2839_v33  ;;  %2714 = vmatprep.subr.bf16.mxu1 %v2713_v34  ;;  %v120_v33 = vld [vmem:[#allocation5 + $0x288] sm:$0xff]  ;;  %v574_v34 = vld [vmem:[#allocation5 + $0x10b8] sm:$0xff] }
  0xed   :  { %2842 = vmatprep.subr.bf16.mxu0 %v2841_v38  ;;  %1466 = vmatprep.mubr.f32.mxu1 %v3395_v41  ;;  %v2731_v38 = vpack.c.bf16 %v566_v28, %v559_v26  ;;  %v2859_v39 = vpack.c.bf16 %v120_v33, %v113_v29  ;;  %v2733_v40 = vpack.c.bf16 %v581_v35, %v574_v34  ;;  %v637_v26 = vld [vmem:[#allocation5 + $0x12b0] sm:$0xff]  ;;  %v184_v28 = vld [vmem:[#allocation5 + $0x488] sm:$0xff]  ;;  %v191_v29 = vld [vmem:[#allocation5 + $0x4c0] sm:$0xff] }
  0xee   :  { %1608 = vmatprep.mubr.f32.mxu0 %v3378_v23  ;;  %v629_v35 = vld [vmem:[#allocation5 + $0x1270] sm:$0xff] }
  0xef   :  { %2716 = vmatpush1.bf16.msra.mxu1 %v2715_v45  ;;  %v2861_v45 = vpack.c.bf16 %v135_v37, %v128_v36  ;;  %v636_v36 = vld [vmem:[#allocation5 + $0x12a8] sm:$0xff]  ;;  %v183_v37 = vld [vmem:[#allocation5 + $0x480] sm:$0xff] }
  0xf0   :  { %2844 = vmatpush1.bf16.msra.mxu0 %v2843_v47  ;;  %2718 = vmatprep.subr.bf16.mxu1 %v2717_v48  ;;  %v134_v47 = vld [vmem:[#allocation5 + $0x2f8] sm:$0xff]  ;;  %v588_v48 = vld [vmem:[#allocation5 + $0x1128] sm:$0xff] }
  0xf1   :  { %2846 = vmatprep.subr.bf16.mxu0 %v2845_v52  ;;  %v2735_v52 = vpack.c.bf16 %v580_v43, %v573_v42  ;;  %v2863_v53 = vpack.c.bf16 %v134_v47, %v127_v44  ;;  %v2737_v54 = vpack.c.bf16 %v595_v49, %v588_v48  ;;  %v651_v42 = vld [vmem:[#allocation5 + $0x1320] sm:$0xff]  ;;  %v198_v43 = vld [vmem:[#allocation5 + $0x4f8] sm:$0xff]  ;;  %v205_v44 = vld [vmem:[#allocation5 + $0x530] sm:$0xff] }
  0xf2   :  { %v643_v49 = vld [vmem:[#allocation5 + $0x12e0] sm:$0xff] }
  0xf3   :  { %2720 = vmatpush1.bf16.msra.mxu1 %v2719_v58  ;;  %v2865_v58 = vpack.c.bf16 %v149_v51, %v142_v50  ;;  %v650_v50 = vld [vmem:[#allocation5 + $0x1318] sm:$0xff]  ;;  %v197_v51 = vld [vmem:[#allocation5 + $0x4f0] sm:$0xff] }
  0xf4   :  { %2848 = vmatpush1.bf16.msra.mxu0 %v2847_v61  ;;  %2722 = vmatprep.subr.bf16.mxu1 %v2721_v62  ;;  %v148_v61 = vld [vmem:[#allocation5 + $0x368] sm:$0xff]  ;;  %v602_v62 = vld [vmem:[#allocation5 + $0x1198] sm:$0xff] }
  0xf5   :  { %2850 = vmatprep.subr.bf16.mxu0 %v2849_v2  ;;  %v2739_v2 = vpack.c.bf16 %v594_v56, %v587_v55  ;;  %v2867_v3 = vpack.c.bf16 %v148_v61, %v141_v57  ;;  %v2741_v4 = vpack.c.bf16 %v609_v63, %v602_v62  ;;  %v665_v55 = vld [vmem:[#allocation5 + $0x1390] sm:$0xff]  ;;  %v212_v56 = vld [vmem:[#allocation5 + $0x568] sm:$0xff]  ;;  %v219_v57 = vld [vmem:[#allocation5 + $0x5a0] sm:$0xff] }
  0xf6   :  { %v657_v63 = vld [vmem:[#allocation5 + $0x1350] sm:$0xff] }
  0xf7   :  { %2724 = vmatpush1.bf16.msra.mxu1 %v2723_v9  ;;  %v2869_v9 = vpack.c.bf16 %v163_v1, %v156_v0  ;;  %v664_v0 = vld [vmem:[#allocation5 + $0x1388] sm:$0xff]  ;;  %v211_v1 = vld [vmem:[#allocation5 + $0x560] sm:$0xff] }
  0xf8   :  { %2852 = vmatpush1.bf16.msra.mxu0 %v2851_v10  ;;  %2726 = vmatprep.subr.bf16.mxu1 %v2725_v11  ;;  %v162_v10 = vld [vmem:[#allocation5 + $0x3d8] sm:$0xff]  ;;  %v616_v11 = vld [vmem:[#allocation5 + $0x1208] sm:$0xff] }
  0xf9   :  { %2854 = vmatprep.subr.bf16.mxu0 %v2853_v15  ;;  %v2743_v15 = vpack.c.bf16 %v608_v6, %v601_v5  ;;  %v2871_v16 = vpack.c.bf16 %v162_v10, %v155_v8  ;;  %v2745_v17 = vpack.c.bf16 %v623_v12, %v616_v11  ;;  %v679_v5 = vld [vmem:[#allocation5 + $0x1400] sm:$0xff]  ;;  %v226_v6 = vld [vmem:[#allocation5 + $0x5d8] sm:$0xff]  ;;  %v233_v8 = vld [vmem:[#allocation5 + $0x610] sm:$0xff] }
  0xfa   :  { %v671_v12 = vld [vmem:[#allocation5 + $0x13c0] sm:$0xff] }
  0xfb   :  { %2728 = vmatpush1.bf16.msra.mxu1 %v2727_v21  ;;  %v2873_v21 = vpack.c.bf16 %v177_v14, %v170_v13  ;;  %v678_v13 = vld [vmem:[#allocation5 + $0x13f8] sm:$0xff]  ;;  %v225_v14 = vld [vmem:[#allocation5 + $0x5d0] sm:$0xff] }
  0xfc   :  { %2856 = vmatpush1.bf16.msra.mxu0 %v2855_v22  ;;  %2730 = vmatprep.subr.bf16.mxu1 %v2729_v25  ;;  %v176_v22 = vld [vmem:[#allocation5 + $0x448] sm:$0xff]  ;;  %v630_v25 = vld [vmem:[#allocation5 + $0x1278] sm:$0xff] }
  0xfd   :  { %2858 = vmatprep.subr.bf16.mxu0 %v2857_v32  ;;  %v2747_v32 = vpack.c.bf16 %v622_v18, %v615_v20  ;;  %v2875_v33 = vpack.c.bf16 %v176_v22, %v169_v19  ;;  %v2749_v34 = vpack.c.bf16 %v637_v26, %v630_v25  ;;  %v693_v20 = vld [vmem:[#allocation5 + $0x1470] sm:$0xff]  ;;  %v240_v18 = vld [vmem:[#allocation5 + $0x648] sm:$0xff]  ;;  %v247_v19 = vld [vmem:[#allocation5 + $0x680] sm:$0xff] }
  0xfe   :  { %v685_v26 = vld [vmem:[#allocation5 + $0x1430] sm:$0xff] }
  0xff   :  { %2732 = vmatpush1.bf16.msra.mxu1 %v2731_v38  ;;  %v2877_v38 = vpack.c.bf16 %v191_v29, %v184_v28  ;;  %v692_v28 = vld [vmem:[#allocation5 + $0x1468] sm:$0xff]  ;;  %v239_v29 = vld [vmem:[#allocation5 + $0x640] sm:$0xff] }
 0x100   :  { %2860 = vmatpush1.bf16.msra.mxu0 %v2859_v39  ;;  %2734 = vmatprep.subr.bf16.mxu1 %v2733_v40  ;;  %v190_v39 = vld [vmem:[#allocation5 + $0x4b8] sm:$0xff]  ;;  %v644_v40 = vld [vmem:[#allocation5 + $0x12e8] sm:$0xff] }
 0x101   :  { %2862 = vmatprep.subr.bf16.mxu0 %v2861_v45  ;;  %v2751_v45 = vpack.c.bf16 %v636_v36, %v629_v35  ;;  %v2879_v47 = vpack.c.bf16 %v190_v39, %v183_v37  ;;  %v2753_v48 = vpack.c.bf16 %v651_v42, %v644_v40  ;;  %v707_v35 = vld [vmem:[#allocation5 + $0x14e0] sm:$0xff]  ;;  %v254_v36 = vld [vmem:[#allocation5 + $0x6b8] sm:$0xff]  ;;  %v261_v37 = vld [vmem:[#allocation5 + $0x6f0] sm:$0xff] }
 0x102   :  { %v699_v42 = vld [vmem:[#allocation5 + $0x14a0] sm:$0xff] }
 0x103   :  { %2736 = vmatpush1.bf16.msra.mxu1 %v2735_v52  ;;  %v2881_v52 = vpack.c.bf16 %v205_v44, %v198_v43  ;;  %v706_v43 = vld [vmem:[#allocation5 + $0x14d8] sm:$0xff]  ;;  %v253_v44 = vld [vmem:[#allocation5 + $0x6b0] sm:$0xff] }
 0x104   :  { %2864 = vmatpush1.bf16.msra.mxu0 %v2863_v53  ;;  %2738 = vmatprep.subr.bf16.mxu1 %v2737_v54  ;;  %v204_v53 = vld [vmem:[#allocation5 + $0x528] sm:$0xff]  ;;  %v658_v54 = vld [vmem:[#allocation5 + $0x1358] sm:$0xff] }
 0x105   :  { %2866 = vmatprep.subr.bf16.mxu0 %v2865_v58  ;;  %v2755_v58 = vpack.c.bf16 %v650_v50, %v643_v49  ;;  %v2883_v61 = vpack.c.bf16 %v204_v53, %v197_v51  ;;  %v2757_v62 = vpack.c.bf16 %v665_v55, %v658_v54  ;;  %v721_v49 = vld [vmem:[#allocation5 + $0x1550] sm:$0xff]  ;;  %v268_v50 = vld [vmem:[#allocation5 + $0x728] sm:$0xff]  ;;  %v275_v51 = vld [vmem:[#allocation5 + $0x760] sm:$0xff] }
 0x106   :  { %v713_v55 = vld [vmem:[#allocation5 + $0x1510] sm:$0xff] }
 0x107   :  { %2740 = vmatpush1.bf16.msra.mxu1 %v2739_v2  ;;  %v2885_v2 = vpack.c.bf16 %v219_v57, %v212_v56  ;;  %v720_v56 = vld [vmem:[#allocation5 + $0x1548] sm:$0xff]  ;;  %v267_v57 = vld [vmem:[#allocation5 + $0x720] sm:$0xff] }
 0x108   :  { %2868 = vmatpush1.bf16.msra.mxu0 %v2867_v3  ;;  %2742 = vmatprep.subr.bf16.mxu1 %v2741_v4  ;;  %v218_v3 = vld [vmem:[#allocation5 + $0x598] sm:$0xff]  ;;  %v672_v4 = vld [vmem:[#allocation5 + $0x13c8] sm:$0xff] }
 0x109   :  { %2870 = vmatprep.subr.bf16.mxu0 %v2869_v9  ;;  %v2759_v9 = vpack.c.bf16 %v664_v0, %v657_v63  ;;  %v2887_v10 = vpack.c.bf16 %v218_v3, %v211_v1  ;;  %v2761_v11 = vpack.c.bf16 %v679_v5, %v672_v4  ;;  %v735_v63 = vld [vmem:[#allocation5 + $0x15c0] sm:$0xff]  ;;  %v282_v0 = vld [vmem:[#allocation5 + $0x798] sm:$0xff]  ;;  %v289_v1 = vld [vmem:[#allocation5 + $0x7d0] sm:$0xff] }
 0x10a   :  { %v727_v5 = vld [vmem:[#allocation5 + $0x1580] sm:$0xff] }
 0x10b   :  { %2744 = vmatpush1.bf16.msra.mxu1 %v2743_v15  ;;  %v2889_v15 = vpack.c.bf16 %v233_v8, %v226_v6  ;;  %v734_v6 = vld [vmem:[#allocation5 + $0x15b8] sm:$0xff]  ;;  %v281_v8 = vld [vmem:[#allocation5 + $0x790] sm:$0xff] }
 0x10c   :  { %2872 = vmatpush1.bf16.msra.mxu0 %v2871_v16  ;;  %2746 = vmatprep.subr.bf16.mxu1 %v2745_v17  ;;  %v232_v16 = vld [vmem:[#allocation5 + $0x608] sm:$0xff]  ;;  %v686_v17 = vld [vmem:[#allocation5 + $0x1438] sm:$0xff] }
 0x10d   :  { %2874 = vmatprep.subr.bf16.mxu0 %v2873_v21  ;;  %v2763_v21 = vpack.c.bf16 %v678_v13, %v671_v12  ;;  %v2891_v22 = vpack.c.bf16 %v232_v16, %v225_v14  ;;  %v2765_v25 = vpack.c.bf16 %v693_v20, %v686_v17  ;;  %v749_v12 = vld [vmem:[#allocation5 + $0x1630] sm:$0xff]  ;;  %v296_v13 = vld [vmem:[#allocation5 + $0x808] sm:$0xff]  ;;  %v303_v14 = vld [vmem:[#allocation5 + $0x840] sm:$0xff] }
 0x10e   :  { %v741_v20 = vld [vmem:[#allocation5 + $0x15f0] sm:$0xff] }
 0x10f   :  { %2748 = vmatpush1.bf16.msra.mxu1 %v2747_v32  ;;  %v2893_v32 = vpack.c.bf16 %v247_v19, %v240_v18  ;;  %v748_v18 = vld [vmem:[#allocation5 + $0x1628] sm:$0xff]  ;;  %v295_v19 = vld [vmem:[#allocation5 + $0x800] sm:$0xff] }
 0x110   :  { %2876 = vmatpush1.bf16.msra.mxu0 %v2875_v33  ;;  %2750 = vmatprep.subr.bf16.mxu1 %v2749_v34  ;;  %v246_v33 = vld [vmem:[#allocation5 + $0x678] sm:$0xff]  ;;  %v700_v34 = vld [vmem:[#allocation5 + $0x14a8] sm:$0xff] }
 0x111   :  { %2878 = vmatprep.subr.bf16.mxu0 %v2877_v38  ;;  %v2767_v38 = vpack.c.bf16 %v692_v28, %v685_v26  ;;  %v2895_v39 = vpack.c.bf16 %v246_v33, %v239_v29  ;;  %v2769_v40 = vpack.c.bf16 %v707_v35, %v700_v34  ;;  %v763_v26 = vld [vmem:[#allocation5 + $0x16a0] sm:$0xff]  ;;  %v310_v28 = vld [vmem:[#allocation5 + $0x878] sm:$0xff]  ;;  %v317_v29 = vld [vmem:[#allocation5 + $0x8b0] sm:$0xff] }
 0x112   :  { %v755_v35 = vld [vmem:[#allocation5 + $0x1660] sm:$0xff] }
 0x113   :  { %2752 = vmatpush1.bf16.msra.mxu1 %v2751_v45  ;;  %v2897_v45 = vpack.c.bf16 %v261_v37, %v254_v36  ;;  %v762_v36 = vld [vmem:[#allocation5 + $0x1698] sm:$0xff]  ;;  %v309_v37 = vld [vmem:[#allocation5 + $0x870] sm:$0xff] }
 0x114   :  { %2880 = vmatpush1.bf16.msra.mxu0 %v2879_v47  ;;  %2754 = vmatprep.subr.bf16.mxu1 %v2753_v48  ;;  %v260_v47 = vld [vmem:[#allocation5 + $0x6e8] sm:$0xff]  ;;  %v714_v48 = vld [vmem:[#allocation5 + $0x1518] sm:$0xff] }
 0x115   :  { %2882 = vmatprep.subr.bf16.mxu0 %v2881_v52  ;;  %v2771_v52 = vpack.c.bf16 %v706_v43, %v699_v42  ;;  %v2899_v53 = vpack.c.bf16 %v260_v47, %v253_v44  ;;  %v2773_v54 = vpack.c.bf16 %v721_v49, %v714_v48  ;;  %v777_v42 = vld [vmem:[#allocation5 + $0x1710] sm:$0xff]  ;;  %v324_v43 = vld [vmem:[#allocation5 + $0x8e8] sm:$0xff]  ;;  %v331_v44 = vld [vmem:[#allocation5 + $0x920] sm:$0xff] }
 0x116   :  { %v769_v49 = vld [vmem:[#allocation5 + $0x16d0] sm:$0xff] }
 0x117   :  { %2756 = vmatpush1.bf16.msra.mxu1 %v2755_v58  ;;  %v2901_v58 = vpack.c.bf16 %v275_v51, %v268_v50  ;;  %v776_v50 = vld [vmem:[#allocation5 + $0x1708] sm:$0xff]  ;;  %v323_v51 = vld [vmem:[#allocation5 + $0x8e0] sm:$0xff] }
 0x118   :  { %2884 = vmatpush1.bf16.msra.mxu0 %v2883_v61  ;;  %2758 = vmatprep.subr.bf16.mxu1 %v2757_v62  ;;  %v274_v61 = vld [vmem:[#allocation5 + $0x758] sm:$0xff]  ;;  %v728_v62 = vld [vmem:[#allocation5 + $0x1588] sm:$0xff] }
 0x119   :  { %2886 = vmatprep.subr.bf16.mxu0 %v2885_v2  ;;  %v2775_v2 = vpack.c.bf16 %v720_v56, %v713_v55  ;;  %v2903_v3 = vpack.c.bf16 %v274_v61, %v267_v57  ;;  %v2777_v4 = vpack.c.bf16 %v735_v63, %v728_v62  ;;  %v791_v55 = vld [vmem:[#allocation5 + $0x1780] sm:$0xff]  ;;  %v338_v56 = vld [vmem:[#allocation5 + $0x958] sm:$0xff]  ;;  %v345_v57 = vld [vmem:[#allocation5 + $0x990] sm:$0xff] }
 0x11a   :  { %v783_v63 = vld [vmem:[#allocation5 + $0x1740] sm:$0xff] }
 0x11b   :  { %2760 = vmatpush1.bf16.msra.mxu1 %v2759_v9  ;;  %v2905_v9 = vpack.c.bf16 %v289_v1, %v282_v0  ;;  %v790_v0 = vld [vmem:[#allocation5 + $0x1778] sm:$0xff]  ;;  %v337_v1 = vld [vmem:[#allocation5 + $0x950] sm:$0xff] }
 0x11c   :  { %2888 = vmatpush1.bf16.msra.mxu0 %v2887_v10  ;;  %2762 = vmatprep.subr.bf16.mxu1 %v2761_v11  ;;  %v288_v10 = vld [vmem:[#allocation5 + $0x7c8] sm:$0xff]  ;;  %v742_v11 = vld [vmem:[#allocation5 + $0x15f8] sm:$0xff] }
 0x11d   :  { %2890 = vmatprep.subr.bf16.mxu0 %v2889_v15  ;;  %v2779_v15 = vpack.c.bf16 %v734_v6, %v727_v5  ;;  %v2907_v16 = vpack.c.bf16 %v288_v10, %v281_v8  ;;  %v2781_v17 = vpack.c.bf16 %v749_v12, %v742_v11  ;;  %v805_v5 = vld [vmem:[#allocation5 + $0x17f0] sm:$0xff]  ;;  %v352_v6 = vld [vmem:[#allocation5 + $0x9c8] sm:$0xff]  ;;  %v359_v8 = vld [vmem:[#allocation5 + $0xa00] sm:$0xff] }
 0x11e   :  { %v797_v12 = vld [vmem:[#allocation5 + $0x17b0] sm:$0xff] }
 0x11f   :  { %2764 = vmatpush1.bf16.msra.mxu1 %v2763_v21  ;;  %v2909_v21 = vpack.c.bf16 %v303_v14, %v296_v13  ;;  %v804_v13 = vld [vmem:[#allocation5 + $0x17e8] sm:$0xff]  ;;  %v351_v14 = vld [vmem:[#allocation5 + $0x9c0] sm:$0xff] }
 0x120   :  { %2892 = vmatpush1.bf16.msra.mxu0 %v2891_v22  ;;  %2766 = vmatprep.subr.bf16.mxu1 %v2765_v25  ;;  %v302_v22 = vld [vmem:[#allocation5 + $0x838] sm:$0xff]  ;;  %v756_v25 = vld [vmem:[#allocation5 + $0x1668] sm:$0xff] }
 0x121   :  { %2894 = vmatprep.subr.bf16.mxu0 %v2893_v32  ;;  %v2783_v32 = vpack.c.bf16 %v748_v18, %v741_v20  ;;  %v2911_v33 = vpack.c.bf16 %v302_v22, %v295_v19  ;;  %v2785_v34 = vpack.c.bf16 %v763_v26, %v756_v25  ;;  %v812_v20 = vld [vmem:[#allocation5 + $0x1828] sm:$0xff]  ;;  %v819_v18 = vld [vmem:[#allocation5 + $0x1860] sm:$0xff]  ;;  %v373_v22 = vld [vmem:[#allocation5 + $0xa70] sm:$0xff]  ;;  %v2799_v25 = vpack.c.bf16 %v804_v13, %v797_v12 }
 0x122   :  { %v414_v12 = vld [vmem:[#allocation5 + $0xbb8] sm:$0xff]  ;;  %v868_v13 = vld [vmem:[#allocation5 + $0x19e8] sm:$0xff] }
 0x123   :  { %2768 = vmatpush1.bf16.msra.mxu1 %v2767_v38  ;;  %v2913_v38 = vpack.c.bf16 %v317_v29, %v310_v28  ;;  %v2801_v28 = vpack.c.bf16 %v819_v18, %v812_v20  ;;  %v811_v29 = vld [vmem:[#allocation5 + $0x1820] sm:$0xff] }
 0x124   :  { %2896 = vmatpush1.bf16.msra.mxu0 %v2895_v39  ;;  %2770 = vmatprep.subr.bf16.mxu1 %v2769_v40  ;;  %v316_v39 = vld [vmem:[#allocation5 + $0x8a8] sm:$0xff]  ;;  %v770_v40 = vld [vmem:[#allocation5 + $0x16d8] sm:$0xff] }
 0x125   :  { %2898 = vmatprep.subr.bf16.mxu0 %v2897_v45  ;;  %v2787_v45 = vpack.c.bf16 %v762_v36, %v755_v35  ;;  %v2915_v47 = vpack.c.bf16 %v316_v39, %v309_v37  ;;  %v2789_v48 = vpack.c.bf16 %v777_v42, %v770_v40  ;;  %v372_v35 = vld [vmem:[#allocation5 + $0xa68] sm:$0xff]  ;;  %v826_v36 = vld [vmem:[#allocation5 + $0x1898] sm:$0xff]  ;;  %v833_v37 = vld [vmem:[#allocation5 + $0x18d0] sm:$0xff] }
 0x126   :  { %v387_v39 = vld [vmem:[#allocation5 + $0xae0] sm:$0xff] }
 0x127   :  { %2772 = vmatpush1.bf16.msra.mxu1 %v2771_v52  ;;  %v2917_v52 = vpack.c.bf16 %v331_v44, %v324_v43  ;;  %v2805_v43 = vpack.c.bf16 %v833_v37, %v826_v36  ;;  %v825_v44 = vld [vmem:[#allocation5 + $0x1890] sm:$0xff] }
 0x128   :  { %2900 = vmatpush1.bf16.msra.mxu0 %v2899_v53  ;;  %2774 = vmatprep.subr.bf16.mxu1 %v2773_v54  ;;  %v330_v53 = vld [vmem:[#allocation5 + $0x918] sm:$0xff]  ;;  %v784_v54 = vld [vmem:[#allocation5 + $0x1748] sm:$0xff] }
 0x129   :  { %2902 = vmatprep.subr.bf16.mxu0 %v2901_v58  ;;  %v2791_v58 = vpack.c.bf16 %v776_v50, %v769_v49  ;;  %v2919_v61 = vpack.c.bf16 %v330_v53, %v323_v51  ;;  %v2793_v62 = vpack.c.bf16 %v791_v55, %v784_v54  ;;  %v386_v49 = vld [vmem:[#allocation5 + $0xad8] sm:$0xff]  ;;  %v840_v50 = vld [vmem:[#allocation5 + $0x1908] sm:$0xff]  ;;  %v847_v51 = vld [vmem:[#allocation5 + $0x1940] sm:$0xff] }
 0x12a   :  { %1467 = vmatmul.mubr.f32.vlgmr.msra.gmra.mrb[2].mxu1 %v3404_v60  ;;  %v401_v53 = vld [vmem:[#allocation5 + $0xb50] sm:$0xff] }
 0x12b   :  { %2776 = vmatpush1.bf16.msra.mxu1 %v2775_v2  ;;  %1609 = vmatmul.mubr.f32.vlgmr.msra.gmra.mrb[2].mxu0 %v3389_v27  ;;  %v2921_v2 = vpack.c.bf16 %v345_v57, %v338_v56  ;;  %v2809_v56 = vpack.c.bf16 %v847_v51, %v840_v50  ;;  %v839_v57 = vld [vmem:[#allocation5 + $0x1900] sm:$0xff] }
 0x12c   :  { %2904 = vmatpush1.bf16.msra.mxu0 %v2903_v3  ;;  %2778 = vmatprep.subr.bf16.mxu1 %v2777_v4  ;;  %v344_v3 = vld [vmem:[#allocation5 + $0x988] sm:$0xff]  ;;  %v798_v4 = vld [vmem:[#allocation5 + $0x17b8] sm:$0xff] }
 0x12d   :  { %2906 = vmatprep.subr.bf16.mxu0 %v2905_v9  ;;  %1537 = vmatprep.mubr.f32.mxu1 %v3407_v7  ;;  %v2795_v9 = vpack.c.bf16 %v790_v0, %v783_v63  ;;  %v2923_v10 = vpack.c.bf16 %v344_v3, %v337_v1  ;;  %v2797_v11 = vpack.c.bf16 %v805_v5, %v798_v4  ;;  %v400_v63 = vld [vmem:[#allocation5 + $0xb48] sm:$0xff]  ;;  %v854_v0 = vld [vmem:[#allocation5 + $0x1978] sm:$0xff]  ;;  %v861_v1 = vld [vmem:[#allocation5 + $0x19b0] sm:$0xff] }
 0x12e   :  { %1679 = vmatprep.mubr.f32.mxu0 %v3381_v24  ;;  %v415_v3 = vld [vmem:[#allocation5 + $0xbc0] sm:$0xff] }
 0x12f   :  { %2780 = vmatpush1.bf16.msra.mxu1 %v2779_v15 }
 0x130   :  { %2908 = vmatpush1.bf16.msra.mxu0 %v2907_v16  ;;  %2782 = vmatprep.subr.bf16.mxu1 %v2781_v17  ;;  %v2925_v16 = vpack.c.bf16 %v359_v8, %v352_v6  ;;  %v358_v17 = vld [vmem:[#allocation5 + $0x9f8] sm:$0xff]  ;;  %v2813_v6 = vpack.c.bf16 %v861_v1, %v854_v0  ;;  %v853_v8 = vld [vmem:[#allocation5 + $0x1970] sm:$0xff] }
 0x131   :  { %2910 = vmatprep.subr.bf16.mxu0 %v2909_v21  ;;  %v366_v21 = vld [vmem:[#allocation5 + $0xa38] sm:$0xff]  ;;  %v2927_v26 = vpack.c.bf16 %v358_v17, %v351_v14  ;;  %v875_v14 = vld [vmem:[#allocation5 + $0x1a20] sm:$0xff]  ;;  %v429_v17 = vld [vmem:[#allocation5 + $0xc30] sm:$0xff] }
 0x133   :  { %2784 = vmatpush1.bf16.msra.mxu1 %v2783_v32  ;;  %v818_v32 = vld [vmem:[#allocation5 + $0x1858] sm:$0xff] }
 0x134   :  { %2912 = vmatpush1.bf16.msra.mxu0 %v2911_v33  ;;  %2786 = vmatprep.subr.bf16.mxu1 %v2785_v34  ;;  %v365_v33 = vld [vmem:[#allocation5 + $0xa30] sm:$0xff]  ;;  %v2929_v34 = vpack.c.bf16 %v373_v22, %v366_v21  ;;  %v2803_v40 = vpack.c.bf16 %v818_v32, %v811_v29  ;;  %v2817_v21 = vpack.c.bf16 %v875_v14, %v868_v13  ;;  %v867_v22 = vld [vmem:[#allocation5 + $0x19e0] sm:$0xff]  ;;  %v428_v29 = vld [vmem:[#allocation5 + $0xc28] sm:$0xff] }
 0x135   :  { %2914 = vmatprep.subr.bf16.mxu0 %v2913_v38  ;;  %v380_v38 = vld [vmem:[#allocation5 + $0xaa8] sm:$0xff]  ;;  %v2931_v42 = vpack.c.bf16 %v372_v35, %v365_v33  ;;  %v882_v32 = vld [vmem:[#allocation5 + $0x1a58] sm:$0xff]  ;;  %v889_v33 = vld [vmem:[#allocation5 + $0x1a90] sm:$0xff] }
 0x136   :  { %v443_v35 = vld [vmem:[#allocation5 + $0xca0] sm:$0xff] }
 0x137   :  { %2788 = vmatpush1.bf16.msra.mxu1 %v2787_v45  ;;  %v832_v45 = vld [vmem:[#allocation5 + $0x18c8] sm:$0xff] }
 0x138   :  { %2916 = vmatpush1.bf16.msra.mxu0 %v2915_v47  ;;  %2790 = vmatprep.subr.bf16.mxu1 %v2789_v48  ;;  %v379_v47 = vld [vmem:[#allocation5 + $0xaa0] sm:$0xff]  ;;  %v2933_v48 = vpack.c.bf16 %v387_v39, %v380_v38  ;;  %v2807_v54 = vpack.c.bf16 %v832_v45, %v825_v44  ;;  %v2821_v38 = vpack.c.bf16 %v889_v33, %v882_v32  ;;  %v881_v39 = vld [vmem:[#allocation5 + $0x1a50] sm:$0xff]  ;;  %v442_v44 = vld [vmem:[#allocation5 + $0xc98] sm:$0xff] }
 0x139   :  { %2918 = vmatprep.subr.bf16.mxu0 %v2917_v52  ;;  %v394_v52 = vld [vmem:[#allocation5 + $0xb18] sm:$0xff]  ;;  %v2935_v55 = vpack.c.bf16 %v386_v49, %v379_v47  ;;  %v896_v45 = vld [vmem:[#allocation5 + $0x1ac8] sm:$0xff]  ;;  %v903_v47 = vld [vmem:[#allocation5 + $0x1b00] sm:$0xff] }
 0x13a   :  { %v457_v49 = vld [vmem:[#allocation5 + $0xd10] sm:$0xff] }
 0x13b   :  { %2792 = vmatpush1.bf16.msra.mxu1 %v2791_v58  ;;  %v846_v58 = vld [vmem:[#allocation5 + $0x1938] sm:$0xff] }
 0x13c   :  { %2920 = vmatpush1.bf16.msra.mxu0 %v2919_v61  ;;  %2794 = vmatprep.subr.bf16.mxu1 %v2793_v62  ;;  %v393_v61 = vld [vmem:[#allocation5 + $0xb10] sm:$0xff]  ;;  %v2937_v62 = vpack.c.bf16 %v401_v53, %v394_v52  ;;  %v2811_v4 = vpack.c.bf16 %v846_v58, %v839_v57  ;;  %v2825_v52 = vpack.c.bf16 %v903_v47, %v896_v45  ;;  %v895_v53 = vld [vmem:[#allocation5 + $0x1ac0] sm:$0xff]  ;;  %v456_v57 = vld [vmem:[#allocation5 + $0xd08] sm:$0xff] }
 0x13d   :  { %v3424_v15 = vpop.f32.mrb[0].mxu1  ;;  %2922 = vmatprep.subr.bf16.mxu0 %v2921_v2  ;;  %v408_v2 = vld [vmem:[#allocation5 + $0xb88] sm:$0xff]  ;;  %v2939_v5 = vpack.c.bf16 %v400_v63, %v393_v61  ;;  %v910_v58 = vld [vmem:[#allocation5 + $0x1b38] sm:$0xff]  ;;  %v917_v61 = vld [vmem:[#allocation5 + $0x1b70] sm:$0xff] }
 0x13e   :  { %v3426_v19 = vpop.f32.mrb[1].mxu1  ;;  %v471_v63 = vld [vmem:[#allocation5 + $0xd80] sm:$0xff] }
 0x13f   :  { %2796 = vmatpush1.bf16.msra.mxu1 %v2795_v9  ;;  %v860_v9 = vld [vmem:[#allocation5 + $0x19a8] sm:$0xff] }
 0x140   :  { %2924 = vmatpush1.bf16.msra.mxu0 %v2923_v10  ;;  %2798 = vmatprep.subr.bf16.mxu1 %v2797_v11  ;;  %v407_v10 = vld [vmem:[#allocation5 + $0xb80] sm:$0xff]  ;;  %v2941_v11 = vpack.c.bf16 %v415_v3, %v408_v2  ;;  %v2815_v20 = vpack.c.bf16 %v860_v9, %v853_v8  ;;  %v2829_v2 = vpack.c.bf16 %v917_v61, %v910_v58  ;;  %v909_v3 = vld [vmem:[#allocation5 + $0x1b30] sm:$0xff]  ;;  %v470_v8 = vld [vmem:[#allocation5 + $0xd78] sm:$0xff] }
 0x141   :  { %2926 = vmatprep.subr.bf16.mxu0 %v2925_v16  ;;  %v422_v16 = vld [vmem:[#allocation5 + $0xbf8] sm:$0xff]  ;;  %v2943_v18 = vpack.c.bf16 %v414_v12, %v407_v10  ;;  %v924_v9 = vld [vmem:[#allocation5 + $0x1ba8] sm:$0xff]  ;;  %v931_v10 = vld [vmem:[#allocation5 + $0x1be0] sm:$0xff] }
 0x142   :  { %v485_v12 = vld [vmem:[#allocation5 + $0xdf0] sm:$0xff] }
 0x143   :  { %2800 = vmatpush1.bf16.msra.mxu1 %v2799_v25  ;;  %v874_v25 = vld [vmem:[#allocation5 + $0x1a18] sm:$0xff] }
 0x144   :  { %2928 = vmatpush1.bf16.msra.mxu0 %v2927_v26  ;;  %2802 = vmatprep.subr.bf16.mxu1 %v2801_v28  ;;  %v421_v26 = vld [vmem:[#allocation5 + $0xbf0] sm:$0xff]  ;;  %v2945_v28 = vpack.c.bf16 %v429_v17, %v422_v16  ;;  %v2819_v36 = vpack.c.bf16 %v874_v25, %v867_v22  ;;  %v2833_v16 = vpack.c.bf16 %v931_v10, %v924_v9  ;;  %v923_v17 = vld [vmem:[#allocation5 + $0x1ba0] sm:$0xff]  ;;  %v484_v22 = vld [vmem:[#allocation5 + $0xde8] sm:$0xff] }
 0x145   :  { %2930 = vmatprep.subr.bf16.mxu0 %v2929_v34  ;;  %v436_v34 = vld [vmem:[#allocation5 + $0xc68] sm:$0xff]  ;;  %v2947_v37 = vpack.c.bf16 %v428_v29, %v421_v26  ;;  %v157_v25 = vld [vmem:[#allocation5 + $0x3b0] sm:$0xff]  ;;  %v499_v29 = vld [vmem:[#allocation5 + $0xe60] sm:$0xff] }
 0x146   :  { %v164_v26 = vld [vmem:[#allocation5 + $0x3e8] sm:$0xff] }
 0x147   :  { %2804 = vmatpush1.bf16.msra.mxu1 %v2803_v40  ;;  %v888_v40 = vld [vmem:[#allocation5 + $0x1a88] sm:$0xff] }
 0x148   :  { %2932 = vmatpush1.bf16.msra.mxu0 %v2931_v42  ;;  %2806 = vmatprep.subr.bf16.mxu1 %v2805_v43  ;;  %v435_v42 = vld [vmem:[#allocation5 + $0xc60] sm:$0xff]  ;;  %v2949_v43 = vpack.c.bf16 %v443_v35, %v436_v34  ;;  %v2823_v50 = vpack.c.bf16 %v888_v40, %v881_v39  ;;  %v3093_v34 = vpack.c.bf16 %v164_v26, %v157_v25  ;;  %v498_v39 = vld [vmem:[#allocation5 + $0xe58] sm:$0xff] }
 0x149   :  { %2934 = vmatprep.subr.bf16.mxu0 %v2933_v48  ;;  %v450_v48 = vld [vmem:[#allocation5 + $0xcd8] sm:$0xff]  ;;  %v2951_v51 = vpack.c.bf16 %v442_v44, %v435_v42  ;;  %v491_v35 = vld [vmem:[#allocation5 + $0xe20] sm:$0xff]  ;;  %v513_v44 = vld [vmem:[#allocation5 + $0xed0] sm:$0xff] }
 0x14a   :  { %v171_v40 = vld [vmem:[#allocation5 + $0x420] sm:$0xff]  ;;  %v178_v42 = vld [vmem:[#allocation5 + $0x458] sm:$0xff]  ;;  %v2967_v47 = vpack.c.bf16 %v498_v39, %v491_v35 }
 0x14b   :  { %2808 = vmatpush1.bf16.msra.mxu1 %v2807_v54  ;;  %v902_v54 = vld [vmem:[#allocation5 + $0x1af8] sm:$0xff]  ;;  %v227_v35 = vld [vmem:[#allocation5 + $0x5e0] sm:$0xff] }
 0x14c   :  { %2936 = vmatpush1.bf16.msra.mxu0 %v2935_v55  ;;  %2810 = vmatprep.subr.bf16.mxu1 %v2809_v56  ;;  %v449_v55 = vld [vmem:[#allocation5 + $0xcd0] sm:$0xff]  ;;  %v2953_v56 = vpack.c.bf16 %v457_v49, %v450_v48  ;;  %v2827_v0 = vpack.c.bf16 %v902_v54, %v895_v53  ;;  %v3097_v48 = vpack.c.bf16 %v178_v42, %v171_v40  ;;  %v512_v53 = vld [vmem:[#allocation5 + $0xec8] sm:$0xff] }
 0x14d   :  { %2938 = vmatprep.subr.bf16.mxu0 %v2937_v62  ;;  %v464_v62 = vld [vmem:[#allocation5 + $0xd48] sm:$0xff]  ;;  %v2955_v1 = vpack.c.bf16 %v456_v57, %v449_v55  ;;  %v505_v49 = vld [vmem:[#allocation5 + $0xe90] sm:$0xff]  ;;  %v527_v57 = vld [vmem:[#allocation5 + $0xf40] sm:$0xff] }
 0x14e   :  { %v185_v54 = vld [vmem:[#allocation5 + $0x490] sm:$0xff]  ;;  %v192_v55 = vld [vmem:[#allocation5 + $0x4c8] sm:$0xff]  ;;  %v2971_v61 = vpack.c.bf16 %v512_v53, %v505_v49 }
 0x14f   :  { %2812 = vmatpush1.bf16.msra.mxu1 %v2811_v4  ;;  %v916_v4 = vld [vmem:[#allocation5 + $0x1b68] sm:$0xff]  ;;  %v241_v49 = vld [vmem:[#allocation5 + $0x650] sm:$0xff] }
 0x150   :  { %2940 = vmatpush1.bf16.msra.mxu0 %v2939_v5  ;;  %2814 = vmatprep.subr.bf16.mxu1 %v2813_v6  ;;  %v463_v5 = vld [vmem:[#allocation5 + $0xd40] sm:$0xff]  ;;  %v2957_v6 = vpack.c.bf16 %v471_v63, %v464_v62  ;;  %v2831_v13 = vpack.c.bf16 %v916_v4, %v909_v3  ;;  %v3101_v62 = vpack.c.bf16 %v192_v55, %v185_v54  ;;  %v526_v3 = vld [vmem:[#allocation5 + $0xf38] sm:$0xff] }
 0x151   :  { %2942 = vmatprep.subr.bf16.mxu0 %v2941_v11  ;;  %v478_v11 = vld [vmem:[#allocation5 + $0xdb8] sm:$0xff]  ;;  %v2959_v14 = vpack.c.bf16 %v470_v8, %v463_v5  ;;  %v519_v63 = vld [vmem:[#allocation5 + $0xf00] sm:$0xff]  ;;  %v541_v8 = vld [vmem:[#allocation5 + $0xfb0] sm:$0xff] }
 0x152   :  { %v199_v4 = vld [vmem:[#allocation5 + $0x500] sm:$0xff]  ;;  %v206_v5 = vld [vmem:[#allocation5 + $0x538] sm:$0xff]  ;;  %v2975_v10 = vpack.c.bf16 %v526_v3, %v519_v63 }
 0x153   :  { %2816 = vmatpush1.bf16.msra.mxu1 %v2815_v20  ;;  %v930_v20 = vld [vmem:[#allocation5 + $0x1bd8] sm:$0xff]  ;;  %v255_v63 = vld [vmem:[#allocation5 + $0x6c0] sm:$0xff] }
 0x154   :  { %2944 = vmatpush1.bf16.msra.mxu0 %v2943_v18  ;;  %2818 = vmatprep.subr.bf16.mxu1 %v2817_v21  ;;  %v477_v18 = vld [vmem:[#allocation5 + $0xdb0] sm:$0xff]  ;;  %v2961_v21 = vpack.c.bf16 %v485_v12, %v478_v11  ;;  %v2835_v32 = vpack.c.bf16 %v930_v20, %v923_v17  ;;  %v3105_v11 = vpack.c.bf16 %v206_v5, %v199_v4  ;;  %v540_v17 = vld [vmem:[#allocation5 + $0xfa8] sm:$0xff] }
 0x155   :  { %2946 = vmatprep.subr.bf16.mxu0 %v2945_v28  ;;  %v492_v28 = vld [vmem:[#allocation5 + $0xe28] sm:$0xff]  ;;  %v2963_v33 = vpack.c.bf16 %v484_v22, %v477_v18  ;;  %v533_v12 = vld [vmem:[#allocation5 + $0xf70] sm:$0xff] }
 0x156   :  { %v213_v20 = vld [vmem:[#allocation5 + $0x570] sm:$0xff]  ;;  %v220_v18 = vld [vmem:[#allocation5 + $0x5a8] sm:$0xff]  ;;  %v2979_v25 = vpack.c.bf16 %v540_v17, %v533_v12 }
 0x157   :  { %2820 = vmatpush1.bf16.msra.mxu1 %v2819_v36  ;;  %v45_v36 = vld [vmem:[#allocation5 + $0x30] sm:$0xff]  ;;  %v3109_v26 = vpack.c.bf16 %v220_v18, %v213_v20 }
 0x158   :  { %2948 = vmatpush1.bf16.msra.mxu0 %v2947_v37  ;;  %2822 = vmatprep.subr.bf16.mxu1 %v2821_v38  ;;  %v52_v37 = vld [vmem:[#allocation5 + $0x68] sm:$0xff]  ;;  %v2965_v38 = vpack.c.bf16 %v499_v29, %v492_v28  ;;  %v547_v28 = vld [vmem:[#allocation5 + $0xfe0] sm:$0xff]  ;;  %v101_v29 = vld [vmem:[#allocation5 + $0x1f0] sm:$0xff] }
 0x159   :  { %2950 = vmatprep.subr.bf16.mxu0 %v2949_v43  ;;  %v506_v43 = vld [vmem:[#allocation5 + $0xe98] sm:$0xff]  ;;  %v3095_v45 = vpack.c.bf16 %v52_v37, %v45_v36  ;;  %v381_v12 = vld [vmem:[#allocation5 + $0xab0] sm:$0xff] }
 0x15a   :  { %v234_v36 = vld [vmem:[#allocation5 + $0x618] sm:$0xff] }
 0x15b   :  { %2824 = vmatpush1.bf16.msra.mxu1 %v2823_v50  ;;  %v59_v50 = vld [vmem:[#allocation5 + $0xa0] sm:$0xff]  ;;  %v562_v37 = vld [vmem:[#allocation5 + $0x1058] sm:$0xff]  ;;  %v3113_v42 = vpack.c.bf16 %v234_v36, %v227_v35 }
 0x15c   :  { %2952 = vmatpush1.bf16.msra.mxu0 %v2951_v51  ;;  %2826 = vmatprep.subr.bf16.mxu1 %v2825_v52  ;;  %v66_v51 = vld [vmem:[#allocation5 + $0xd8] sm:$0xff]  ;;  %v2969_v52 = vpack.c.bf16 %v513_v44, %v506_v43  ;;  %v561_v43 = vld [vmem:[#allocation5 + $0x1050] sm:$0xff]  ;;  %v115_v44 = vld [vmem:[#allocation5 + $0x260] sm:$0xff] }
 0x15d   :  { %2954 = vmatprep.subr.bf16.mxu0 %v2953_v56  ;;  %v520_v56 = vld [vmem:[#allocation5 + $0xf08] sm:$0xff]  ;;  %v3099_v58 = vpack.c.bf16 %v66_v51, %v59_v50 }
 0x15e   :  { %v248_v50 = vld [vmem:[#allocation5 + $0x688] sm:$0xff] }
 0x15f   :  { %2828 = vmatpush1.bf16.msra.mxu1 %v2827_v0  ;;  %v73_v0 = vld [vmem:[#allocation5 + $0x110] sm:$0xff]  ;;  %v576_v51 = vld [vmem:[#allocation5 + $0x10c8] sm:$0xff]  ;;  %v3117_v55 = vpack.c.bf16 %v248_v50, %v241_v49 }
 0x160   :  { %2956 = vmatpush1.bf16.msra.mxu0 %v2955_v1  ;;  %2830 = vmatprep.subr.bf16.mxu1 %v2829_v2  ;;  %v80_v1 = vld [vmem:[#allocation5 + $0x148] sm:$0xff]  ;;  %v2973_v2 = vpack.c.bf16 %v527_v57, %v520_v56  ;;  %v575_v56 = vld [vmem:[#allocation5 + $0x10c0] sm:$0xff]  ;;  %v129_v57 = vld [vmem:[#allocation5 + $0x2d0] sm:$0xff] }
 0x161   :  { %2958 = vmatprep.subr.bf16.mxu0 %v2957_v6  ;;  %v534_v6 = vld [vmem:[#allocation5 + $0xf78] sm:$0xff]  ;;  %v3103_v9 = vpack.c.bf16 %v80_v1, %v73_v0 }
 0x162   :  { %v262_v0 = vld [vmem:[#allocation5 + $0x6f8] sm:$0xff] }
 0x163   :  { %2832 = vmatpush1.bf16.msra.mxu1 %v2831_v13  ;;  %v87_v13 = vld [vmem:[#allocation5 + $0x180] sm:$0xff]  ;;  %v590_v1 = vld [vmem:[#allocation5 + $0x1138] sm:$0xff]  ;;  %v3121_v5 = vpack.c.bf16 %v262_v0, %v255_v63  ;;  %v645_v63 = vld [vmem:[#allocation5 + $0x12f0] sm:$0xff] }
 0x164   :  { %2960 = vmatpush1.bf16.msra.mxu0 %v2959_v14  ;;  %2834 = vmatprep.subr.bf16.mxu1 %v2833_v16  ;;  %v94_v14 = vld [vmem:[#allocation5 + $0x1b8] sm:$0xff]  ;;  %v2977_v16 = vpack.c.bf16 %v541_v8, %v534_v6  ;;  %v589_v6 = vld [vmem:[#allocation5 + $0x1130] sm:$0xff]  ;;  %v143_v8 = vld [vmem:[#allocation5 + $0x340] sm:$0xff] }
 0x165   :  { %2962 = vmatprep.subr.bf16.mxu0 %v2961_v21  ;;  %v548_v21 = vld [vmem:[#allocation5 + $0xfe8] sm:$0xff]  ;;  %v3107_v22 = vpack.c.bf16 %v94_v14, %v87_v13  ;;  %v311_v0 = vld [vmem:[#allocation5 + $0x880] sm:$0xff] }
 0x166   :  { %v388_v13 = vld [vmem:[#allocation5 + $0xae8] sm:$0xff] }
 0x167   :  { %2836 = vmatpush1.bf16.msra.mxu1 %v2835_v32  ;;  %v108_v32 = vld [vmem:[#allocation5 + $0x228] sm:$0xff]  ;;  %v3125_v18 = vpack.c.bf16 %v388_v13, %v381_v12  ;;  %v659_v12 = vld [vmem:[#allocation5 + $0x1360] sm:$0xff]  ;;  %v325_v13 = vld [vmem:[#allocation5 + $0x8f0] sm:$0xff] }
 0x168   :  { %2964 = vmatpush1.bf16.msra.mxu0 %v2963_v33  ;;  %3094 = vmatprep.subr.bf16.mxu1 %v3093_v34  ;;  %v554_v34 = vld [vmem:[#allocation5 + $0x1018] sm:$0xff]  ;;  %v3111_v39 = vpack.c.bf16 %v108_v32, %v101_v29  ;;  %v604_v14 = vld [vmem:[#allocation5 + $0x11a8] sm:$0xff] }
 0x169   :  { %2966 = vmatprep.subr.bf16.mxu0 %v2965_v38  ;;  %v569_v38 = vld [vmem:[#allocation5 + $0x1090] sm:$0xff]  ;;  %v2983_v40 = vpack.c.bf16 %v554_v34, %v547_v28  ;;  %v395_v28 = vld [vmem:[#allocation5 + $0xb20] sm:$0xff]  ;;  %v402_v29 = vld [vmem:[#allocation5 + $0xb58] sm:$0xff] }
 0x16a   :  { %1538 = vmatmul.mubr.f32.vlgmr.msra.gmra.mrb[2].mxu1 %v3414_v31  ;;  %v618_v32 = vld [vmem:[#allocation5 + $0x1218] sm:$0xff]  ;;  %v3129_v36 = vpack.c.bf16 %v402_v29, %v395_v28  ;;  %v673_v28 = vld [vmem:[#allocation5 + $0x13d0] sm:$0xff]  ;;  %v339_v29 = vld [vmem:[#allocation5 + $0x960] sm:$0xff] }
 0x16b   :  { %1680 = vmatmul.mubr.f32.vlgmr.msra.gmra.mrb[2].mxu0 %v3392_v30  ;;  %3096 = vmatpush3.bf16.msra.mxu1 %v3095_v45  ;;  %v122_v45 = vld [vmem:[#allocation5 + $0x298] sm:$0xff] }
 0x16c   :  { %2968 = vmatpush1.bf16.msra.mxu0 %v2967_v47  ;;  %3098 = vmatprep.subr.bf16.mxu1 %v3097_v48  ;;  %v2985_v47 = vpack.c.bf16 %v569_v38, %v562_v37  ;;  %v568_v48 = vld [vmem:[#allocation5 + $0x1088] sm:$0xff]  ;;  %v3115_v53 = vpack.c.bf16 %v122_v45, %v115_v44  ;;  %v617_v37 = vld [vmem:[#allocation5 + $0x1210] sm:$0xff]  ;;  %v283_v38 = vld [vmem:[#allocation5 + $0x7a0] sm:$0xff] }
 0x16d   :  { %2970 = vmatprep.subr.bf16.mxu0 %v2969_v52  ;;  %1892 = vmatprep.mubr.f32.mxu1 %v3378_v23  ;;  %v555_v23 = vld [vmem:[#allocation5 + $0x1020] sm:$0xff]  ;;  %v2987_v54 = vpack.c.bf16 %v568_v48, %v561_v43  ;;  %v409_v43 = vld [vmem:[#allocation5 + $0xb90] sm:$0xff]  ;;  %v416_v44 = vld [vmem:[#allocation5 + $0xbc8] sm:$0xff] }
 0x16e   :  { %1750 = vmatprep.mubr.f32.mxu0 %v3395_v41  ;;  %v2981_v33 = vpack.c.bf16 %v555_v23, %v548_v21  ;;  %v583_v52 = vld [vmem:[#allocation5 + $0x1100] sm:$0xff]  ;;  %v269_v23 = vld [vmem:[#allocation5 + $0x730] sm:$0xff]  ;;  %v632_v45 = vld [vmem:[#allocation5 + $0x1288] sm:$0xff]  ;;  %v3133_v50 = vpack.c.bf16 %v416_v44, %v409_v43 }
 0x16f   :  { %3100 = vmatpush3.bf16.msra.mxu1 %v3099_v58  ;;  %v136_v58 = vld [vmem:[#allocation5 + $0x308] sm:$0xff]  ;;  %v603_v21 = vld [vmem:[#allocation5 + $0x11a0] sm:$0xff]  ;;  %v353_v44 = vld [vmem:[#allocation5 + $0x9d0] sm:$0xff] }
 0x170   :  { %2972 = vmatpush1.bf16.msra.mxu0 %v2971_v61  ;;  %3102 = vmatprep.subr.bf16.mxu1 %v3101_v62  ;;  %v2989_v61 = vpack.c.bf16 %v583_v52, %v576_v51  ;;  %v582_v62 = vld [vmem:[#allocation5 + $0x10f8] sm:$0xff]  ;;  %v3119_v3 = vpack.c.bf16 %v136_v58, %v129_v57  ;;  %v631_v51 = vld [vmem:[#allocation5 + $0x1280] sm:$0xff]  ;;  %v297_v52 = vld [vmem:[#allocation5 + $0x810] sm:$0xff] }
 0x171   :  { %2974 = vmatprep.subr.bf16.mxu0 %v2973_v2  ;;  %v597_v2 = vld [vmem:[#allocation5 + $0x1170] sm:$0xff]  ;;  %v2991_v4 = vpack.c.bf16 %v582_v62, %v575_v56  ;;  %v423_v56 = vld [vmem:[#allocation5 + $0xc00] sm:$0xff]  ;;  %v430_v57 = vld [vmem:[#allocation5 + $0xc38] sm:$0xff] }
 0x172   :  { %v646_v58 = vld [vmem:[#allocation5 + $0x12f8] sm:$0xff]  ;;  %v687_v43 = vld [vmem:[#allocation5 + $0x1440] sm:$0xff] }
 0x173   :  { %3104 = vmatpush3.bf16.msra.mxu1 %v3103_v9  ;;  %v150_v9 = vld [vmem:[#allocation5 + $0x378] sm:$0xff] }
 0x174   :  { %2976 = vmatpush1.bf16.msra.mxu0 %v2975_v10  ;;  %3106 = vmatprep.subr.bf16.mxu1 %v3105_v11  ;;  %v2993_v10 = vpack.c.bf16 %v597_v2, %v590_v1  ;;  %v596_v11 = vld [vmem:[#allocation5 + $0x1168] sm:$0xff]  ;;  %v3123_v17 = vpack.c.bf16 %v150_v9, %v143_v8  ;;  %v318_v1 = vld [vmem:[#allocation5 + $0x8b8] sm:$0xff]  ;;  %v667_v8 = vld [vmem:[#allocation5 + $0x13a0] sm:$0xff] }
 0x175   :  { %2978 = vmatprep.subr.bf16.mxu0 %v2977_v16  ;;  %v611_v16 = vld [vmem:[#allocation5 + $0x11e0] sm:$0xff]  ;;  %v2995_v20 = vpack.c.bf16 %v596_v11, %v589_v6  ;;  %v660_v6 = vld [vmem:[#allocation5 + $0x1368] sm:$0xff]  ;;  %v3139_v9 = vpack.c.bf16 %v318_v1, %v311_v0 }
 0x176   :  { %v723_v0 = vld [vmem:[#allocation5 + $0x1560] sm:$0xff] }
 0x177   :  { %3108 = vmatpush3.bf16.msra.mxu1 %v3107_v22  ;;  %v276_v22 = vld [vmem:[#allocation5 + $0x768] sm:$0xff] }
 0x178   :  { %2980 = vmatpush1.bf16.msra.mxu0 %v2979_v25  ;;  %3110 = vmatprep.subr.bf16.mxu1 %v3109_v26  ;;  %v2997_v25 = vpack.c.bf16 %v611_v16, %v604_v14  ;;  %v610_v26 = vld [vmem:[#allocation5 + $0x11d8] sm:$0xff]  ;;  %v3127_v34 = vpack.c.bf16 %v276_v22, %v269_v23  ;;  %v332_v14 = vld [vmem:[#allocation5 + $0x928] sm:$0xff]  ;;  %v3013_v16 = vpack.c.bf16 %v667_v8, %v660_v6  ;;  %v681_v23 = vld [vmem:[#allocation5 + $0x1410] sm:$0xff] }
 0x179   :  { %2982 = vmatprep.subr.bf16.mxu0 %v2981_v33  ;;  %v625_v33 = vld [vmem:[#allocation5 + $0x1250] sm:$0xff]  ;;  %v2999_v35 = vpack.c.bf16 %v610_v26, %v603_v21  ;;  %v674_v21 = vld [vmem:[#allocation5 + $0x13d8] sm:$0xff]  ;;  %v3143_v22 = vpack.c.bf16 %v332_v14, %v325_v13  ;;  %v500_v6 = vld [vmem:[#allocation5 + $0xe68] sm:$0xff] }
 0x17a   :  { %v737_v13 = vld [vmem:[#allocation5 + $0x15d0] sm:$0xff] }
 0x17b   :  { %3112 = vmatpush3.bf16.msra.mxu1 %v3111_v39  ;;  %v290_v39 = vld [vmem:[#allocation5 + $0x7d8] sm:$0xff] }
 0x17c   :  { %2984 = vmatpush1.bf16.msra.mxu0 %v2983_v40  ;;  %3114 = vmatprep.subr.bf16.mxu1 %v3113_v42  ;;  %v3001_v40 = vpack.c.bf16 %v625_v33, %v618_v32  ;;  %v624_v42 = vld [vmem:[#allocation5 + $0x1248] sm:$0xff]  ;;  %v3131_v48 = vpack.c.bf16 %v290_v39, %v283_v38  ;;  %v346_v32 = vld [vmem:[#allocation5 + $0x998] sm:$0xff]  ;;  %v3017_v33 = vpack.c.bf16 %v681_v23, %v674_v21  ;;  %v695_v38 = vld [vmem:[#allocation5 + $0x1480] sm:$0xff] }
 0x17d   :  { %2986 = vmatprep.subr.bf16.mxu0 %v2985_v47  ;;  %v639_v47 = vld [vmem:[#allocation5 + $0x12c0] sm:$0xff]  ;;  %v3003_v49 = vpack.c.bf16 %v624_v42, %v617_v37  ;;  %v688_v37 = vld [vmem:[#allocation5 + $0x1448] sm:$0xff]  ;;  %v3147_v39 = vpack.c.bf16 %v346_v32, %v339_v29  ;;  %v514_v21 = vld [vmem:[#allocation5 + $0xed8] sm:$0xff] }
 0x17e   :  { %v751_v29 = vld [vmem:[#allocation5 + $0x1640] sm:$0xff] }
 0x17f   :  { %3116 = vmatpush3.bf16.msra.mxu1 %v3115_v53  ;;  %v304_v53 = vld [vmem:[#allocation5 + $0x848] sm:$0xff] }
 0x180   :  { %2988 = vmatpush1.bf16.msra.mxu0 %v2987_v54  ;;  %3118 = vmatprep.subr.bf16.mxu1 %v3117_v55  ;;  %v3005_v54 = vpack.c.bf16 %v639_v47, %v632_v45  ;;  %v638_v55 = vld [vmem:[#allocation5 + $0x12b8] sm:$0xff]  ;;  %v360_v45 = vld [vmem:[#allocation5 + $0xa08] sm:$0xff]  ;;  %v3021_v47 = vpack.c.bf16 %v695_v38, %v688_v37 }
 0x181   :  { %2990 = vmatprep.subr.bf16.mxu0 %v2989_v61  ;;  %v3135_v61 = vpack.c.bf16 %v304_v53, %v297_v52  ;;  %v3007_v62 = vpack.c.bf16 %v638_v55, %v631_v51  ;;  %v702_v51 = vld [vmem:[#allocation5 + $0x14b8] sm:$0xff]  ;;  %v709_v52 = vld [vmem:[#allocation5 + $0x14f0] sm:$0xff]  ;;  %v3151_v53 = vpack.c.bf16 %v360_v45, %v353_v44  ;;  %v528_v37 = vld [vmem:[#allocation5 + $0xf48] sm:$0xff] }
 0x183   :  { %3120 = vmatpush3.bf16.msra.mxu1 %v3119_v3  ;;  %v652_v3 = vld [vmem:[#allocation5 + $0x1328] sm:$0xff] }
 0x184   :  { %2992 = vmatpush1.bf16.msra.mxu0 %v2991_v4  ;;  %3122 = vmatprep.subr.bf16.mxu1 %v3121_v5  ;;  %v437_v4 = vld [vmem:[#allocation5 + $0xc70] sm:$0xff]  ;;  %v444_v5 = vld [vmem:[#allocation5 + $0xca8] sm:$0xff] }
 0x185   :  { %2994 = vmatprep.subr.bf16.mxu0 %v2993_v10  ;;  %v3011_v10 = vpack.c.bf16 %v652_v3, %v645_v63  ;;  %v3141_v11 = vpack.c.bf16 %v444_v5, %v437_v4  ;;  %v716_v63 = vld [vmem:[#allocation5 + $0x1528] sm:$0xff]  ;;  %v715_v4 = vld [vmem:[#allocation5 + $0x1520] sm:$0xff]  ;;  %v493_v5 = vld [vmem:[#allocation5 + $0xe30] sm:$0xff] }
 0x186   :  { %v3029_v8 = vpack.c.bf16 %v723_v0, %v716_v63  ;;  %v3159_v14 = vpack.c.bf16 %v500_v6, %v493_v5  ;;  %v778_v63 = vld [vmem:[#allocation5 + $0x1718] sm:$0xff]  ;;  %v675_v0 = vld [vmem:[#allocation5 + $0x13e0] sm:$0xff] }
 0x187   :  { %3124 = vmatpush3.bf16.msra.mxu1 %v3123_v17  ;;  %v666_v17 = vld [vmem:[#allocation5 + $0x1398] sm:$0xff] }
 0x188   :  { %2996 = vmatpush1.bf16.msra.mxu0 %v2995_v20  ;;  %3126 = vmatprep.subr.bf16.mxu1 %v3125_v18  ;;  %v451_v20 = vld [vmem:[#allocation5 + $0xce0] sm:$0xff]  ;;  %v458_v18 = vld [vmem:[#allocation5 + $0xd18] sm:$0xff] }
 0x189   :  { %2998 = vmatprep.subr.bf16.mxu0 %v2997_v25  ;;  %v3015_v25 = vpack.c.bf16 %v666_v17, %v659_v12  ;;  %v3145_v26 = vpack.c.bf16 %v458_v18, %v451_v20  ;;  %v730_v12 = vld [vmem:[#allocation5 + $0x1598] sm:$0xff]  ;;  %v729_v20 = vld [vmem:[#allocation5 + $0x1590] sm:$0xff]  ;;  %v507_v18 = vld [vmem:[#allocation5 + $0xea0] sm:$0xff] }
 0x18a   :  { %1893 = vmatmul.mubr.f32.vlgmr.msra.gmra.mrb[4].mxu1 %v3389_v27  ;;  %v653_v27 = vld [vmem:[#allocation5 + $0x1330] sm:$0xff]  ;;  %v3033_v23 = vpack.c.bf16 %v737_v13, %v730_v12  ;;  %v3163_v32 = vpack.c.bf16 %v514_v21, %v507_v18  ;;  %v792_v12 = vld [vmem:[#allocation5 + $0x1788] sm:$0xff] }
 0x18b   :  { %3128 = vmatpush3.bf16.msra.mxu1 %v3127_v34  ;;  %1962 = vmatprep.mubr.f32.mxu1 %v3381_v24  ;;  %v3137_v24 = vpack.c.bf16 %v430_v57, %v423_v56  ;;  %v3009_v2 = vpack.c.bf16 %v653_v27, %v646_v58  ;;  %v680_v34 = vld [vmem:[#allocation5 + $0x1408] sm:$0xff]  ;;  %v701_v56 = vld [vmem:[#allocation5 + $0x14b0] sm:$0xff]  ;;  %v367_v57 = vld [vmem:[#allocation5 + $0xa40] sm:$0xff]  ;;  %v3025_v27 = vpack.c.bf16 %v709_v52, %v702_v51 }
 0x18c   :  { %3000 = vmatpush1.bf16.msra.mxu0 %v2999_v35  ;;  %3130 = vmatprep.subr.bf16.mxu1 %v3129_v36  ;;  %v465_v35 = vld [vmem:[#allocation5 + $0xd50] sm:$0xff]  ;;  %v472_v36 = vld [vmem:[#allocation5 + $0xd88] sm:$0xff]  ;;  %v374_v58 = vld [vmem:[#allocation5 + $0xa78] sm:$0xff] }
 0x18d   :  { %3002 = vmatprep.subr.bf16.mxu0 %v3001_v40  ;;  %v3019_v40 = vpack.c.bf16 %v680_v34, %v673_v28  ;;  %v3149_v42 = vpack.c.bf16 %v472_v36, %v465_v35  ;;  %v3155_v1 = vpack.c.bf16 %v374_v58, %v367_v57  ;;  %v744_v28 = vld [vmem:[#allocation5 + $0x1608] sm:$0xff]  ;;  %v743_v35 = vld [vmem:[#allocation5 + $0x1600] sm:$0xff]  ;;  %v521_v36 = vld [vmem:[#allocation5 + $0xf10] sm:$0xff] }
 0x18e   :  { %v3037_v38 = vpack.c.bf16 %v751_v29, %v744_v28  ;;  %v3167_v44 = vpack.c.bf16 %v528_v37, %v521_v36  ;;  %v764_v52 = vld [vmem:[#allocation5 + $0x16a8] sm:$0xff]  ;;  %v689_v13 = vld [vmem:[#allocation5 + $0x1450] sm:$0xff]  ;;  %v806_v28 = vld [vmem:[#allocation5 + $0x17f8] sm:$0xff] }
 0x18f   :  { %3132 = vmatpush3.bf16.msra.mxu1 %v3131_v48  ;;  %v694_v48 = vld [vmem:[#allocation5 + $0x1478] sm:$0xff]  ;;  %v703_v29 = vld [vmem:[#allocation5 + $0x14c0] sm:$0xff] }
 0x190   :  { %3004 = vmatpush1.bf16.msra.mxu0 %v3003_v49  ;;  %3134 = vmatprep.subr.bf16.mxu1 %v3133_v50  ;;  %v479_v49 = vld [vmem:[#allocation5 + $0xdc0] sm:$0xff]  ;;  %v486_v50 = vld [vmem:[#allocation5 + $0xdf8] sm:$0xff] }
 0x191   :  { %3006 = vmatprep.subr.bf16.mxu0 %v3005_v54  ;;  %v3023_v54 = vpack.c.bf16 %v694_v48, %v687_v43  ;;  %v3153_v55 = vpack.c.bf16 %v486_v50, %v479_v49  ;;  %v765_v43 = vld [vmem:[#allocation5 + $0x16b0] sm:$0xff]  ;;  %v535_v49 = vld [vmem:[#allocation5 + $0xf80] sm:$0xff]  ;;  %v542_v50 = vld [vmem:[#allocation5 + $0xfb8] sm:$0xff] }
 0x192   :  { %v757_v48 = vld [vmem:[#allocation5 + $0x1670] sm:$0xff] }
 0x193   :  { %3136 = vmatpush3.bf16.msra.mxu1 %v3135_v61  ;;  %v708_v61 = vld [vmem:[#allocation5 + $0x14e8] sm:$0xff]  ;;  %v3043_v57 = vpack.c.bf16 %v764_v52, %v757_v48  ;;  %v829_v48 = vld [vmem:[#allocation5 + $0x18b0] sm:$0xff] }
 0x194   :  { %3008 = vmatpush1.bf16.msra.mxu0 %v3007_v62  ;;  %3138 = vmatprep.subr.bf16.mxu1 %v3137_v24  ;;  %v605_v62 = vld [vmem:[#allocation5 + $0x11b0] sm:$0xff]  ;;  %v612_v24 = vld [vmem:[#allocation5 + $0x11e8] sm:$0xff] }
 0x195   :  { %3010 = vmatprep.subr.bf16.mxu0 %v3009_v2  ;;  %v3027_v2 = vpack.c.bf16 %v708_v61, %v701_v56  ;;  %v3157_v3 = vpack.c.bf16 %v612_v24, %v605_v62  ;;  %v3171_v56 = vpack.c.bf16 %v542_v50, %v535_v49  ;;  %v549_v61 = vld [vmem:[#allocation5 + $0xff0] sm:$0xff]  ;;  %v556_v62 = vld [vmem:[#allocation5 + $0x1028] sm:$0xff] }
 0x196   :  { %v836_v49 = vld [vmem:[#allocation5 + $0x18e8] sm:$0xff] }
 0x197   :  { %3140 = vmatpush3.bf16.msra.mxu1 %v3139_v9  ;;  %v722_v9 = vld [vmem:[#allocation5 + $0x1558] sm:$0xff]  ;;  %v828_v50 = vld [vmem:[#allocation5 + $0x18a8] sm:$0xff] }
 0x198   :  { %3012 = vmatpush1.bf16.msra.mxu0 %v3011_v10  ;;  %3142 = vmatprep.subr.bf16.mxu1 %v3141_v11  ;;  %v619_v10 = vld [vmem:[#allocation5 + $0x1220] sm:$0xff]  ;;  %v626_v11 = vld [vmem:[#allocation5 + $0x1258] sm:$0xff] }
 0x199   :  { %3014 = vmatprep.subr.bf16.mxu0 %v3013_v16  ;;  %v3031_v16 = vpack.c.bf16 %v722_v9, %v715_v4  ;;  %v3161_v17 = vpack.c.bf16 %v626_v11, %v619_v10  ;;  %v3175_v4 = vpack.c.bf16 %v556_v62, %v549_v61  ;;  %v563_v9 = vld [vmem:[#allocation5 + $0x1060] sm:$0xff]  ;;  %v570_v10 = vld [vmem:[#allocation5 + $0x1098] sm:$0xff]  ;;  %v849_v62 = vld [vmem:[#allocation5 + $0x1950] sm:$0xff] }
 0x19a   :  { %v842_v61 = vld [vmem:[#allocation5 + $0x1918] sm:$0xff] }
 0x19b   :  { %3144 = vmatpush3.bf16.msra.mxu1 %v3143_v22  ;;  %v736_v22 = vld [vmem:[#allocation5 + $0x15c8] sm:$0xff] }
 0x19c   :  { %3016 = vmatpush1.bf16.msra.mxu0 %v3015_v25  ;;  %3146 = vmatprep.subr.bf16.mxu1 %v3145_v26  ;;  %v633_v25 = vld [vmem:[#allocation5 + $0x1290] sm:$0xff]  ;;  %v640_v26 = vld [vmem:[#allocation5 + $0x12c8] sm:$0xff] }
 0x19d   :  { %3018 = vmatprep.subr.bf16.mxu0 %v3017_v33  ;;  %v3035_v33 = vpack.c.bf16 %v736_v22, %v729_v20  ;;  %v3165_v34 = vpack.c.bf16 %v640_v26, %v633_v25  ;;  %v3179_v20 = vpack.c.bf16 %v570_v10, %v563_v9  ;;  %v577_v22 = vld [vmem:[#allocation5 + $0x10d0] sm:$0xff]  ;;  %v584_v25 = vld [vmem:[#allocation5 + $0x1108] sm:$0xff]  ;;  %v863_v10 = vld [vmem:[#allocation5 + $0x19c0] sm:$0xff] }
 0x19e   :  { %v856_v9 = vld [vmem:[#allocation5 + $0x1988] sm:$0xff] }
 0x19f   :  { %3148 = vmatpush3.bf16.msra.mxu1 %v3147_v39  ;;  %v750_v39 = vld [vmem:[#allocation5 + $0x1638] sm:$0xff] }
 0x1a0   :  { %3020 = vmatpush1.bf16.msra.mxu0 %v3019_v40  ;;  %3150 = vmatprep.subr.bf16.mxu1 %v3149_v42  ;;  %v647_v40 = vld [vmem:[#allocation5 + $0x1300] sm:$0xff]  ;;  %v654_v42 = vld [vmem:[#allocation5 + $0x1338] sm:$0xff]  ;;  %v3039_v45 = vpack.c.bf16 %v750_v39, %v743_v35  ;;  %v821_v35 = vld [vmem:[#allocation5 + $0x1870] sm:$0xff] }
 0x1a1   :  { %3022 = vmatprep.subr.bf16.mxu0 %v3021_v47  ;;  %v3169_v47 = vpack.c.bf16 %v654_v42, %v647_v40 }
 0x1a3   :  { %3152 = vmatpush3.bf16.msra.mxu1 %v3151_v53  ;;  %v661_v53 = vld [vmem:[#allocation5 + $0x1370] sm:$0xff] }
 0x1a4   :  { %3024 = vmatpush1.bf16.msra.mxu0 %v3023_v54  ;;  %3154 = vmatprep.subr.bf16.mxu1 %v3153_v55  ;;  %v668_v54 = vld [vmem:[#allocation5 + $0x13a8] sm:$0xff] }
 0x1a5   :  { %3026 = vmatprep.subr.bf16.mxu0 %v3025_v27  ;;  %v772_v55 = vld [vmem:[#allocation5 + $0x16e8] sm:$0xff]  ;;  %v3173_v58 = vpack.c.bf16 %v668_v54, %v661_v53  ;;  %v771_v27 = vld [vmem:[#allocation5 + $0x16e0] sm:$0xff]  ;;  %v3189_v53 = vpack.c.bf16 %v836_v49, %v829_v48  ;;  %v890_v49 = vld [vmem:[#allocation5 + $0x1a98] sm:$0xff] }
 0x1a6   :  { %v3047_v5 = vpack.c.bf16 %v778_v63, %v771_v27  ;;  %v827_v54 = vld [vmem:[#allocation5 + $0x18a0] sm:$0xff]  ;;  %v850_v27 = vld [vmem:[#allocation5 + $0x1958] sm:$0xff] }
 0x1a7   :  { %3156 = vmatpush3.bf16.msra.mxu1 %v3155_v1  ;;  %v682_v1 = vld [vmem:[#allocation5 + $0x1418] sm:$0xff] }
 0x1a8   :  { %3028 = vmatpush1.bf16.msra.mxu0 %v3027_v2  ;;  %3158 = vmatprep.subr.bf16.mxu1 %v3157_v3  ;;  %v786_v2 = vld [vmem:[#allocation5 + $0x1758] sm:$0xff]  ;;  %v793_v3 = vld [vmem:[#allocation5 + $0x1790] sm:$0xff]  ;;  %v3177_v6 = vpack.c.bf16 %v682_v1, %v675_v0 }
 0x1a9   :  { %3030 = vmatprep.subr.bf16.mxu0 %v3029_v8  ;;  %v785_v8 = vld [vmem:[#allocation5 + $0x1750] sm:$0xff]  ;;  %v3049_v11 = vpack.c.bf16 %v793_v3, %v786_v2  ;;  %v731_v2 = vld [vmem:[#allocation5 + $0x15a0] sm:$0xff]  ;;  %v738_v3 = vld [vmem:[#allocation5 + $0x15d8] sm:$0xff] }
 0x1aa   :  { %1963 = vmatmul.mubr.f32.vlgmr.msra.gmra.mrb[6].mxu1 %v3392_v30  ;;  %v758_v30 = vld [vmem:[#allocation5 + $0x1678] sm:$0xff]  ;;  %v3051_v18 = vpack.c.bf16 %v792_v12, %v785_v8  ;;  %v841_v1 = vld [vmem:[#allocation5 + $0x1910] sm:$0xff]  ;;  %v864_v8 = vld [vmem:[#allocation5 + $0x19c8] sm:$0xff] }
 0x1ab   :  { %1751 = vmatmul.mubr.f32.vlgmr.msra.gmra.mrb[2].mxu0 %v3404_v60  ;;  %3160 = vmatpush3.bf16.msra.mxu1 %v3159_v14  ;;  %v3041_v51 = vpack.c.bf16 %v765_v43, %v758_v30  ;;  %v696_v14 = vld [vmem:[#allocation5 + $0x1488] sm:$0xff]  ;;  %v813_v30 = vld [vmem:[#allocation5 + $0x1830] sm:$0xff]  ;;  %v591_v43 = vld [vmem:[#allocation5 + $0x1140] sm:$0xff] }
 0x1ac   :  { %3032 = vmatpush1.bf16.msra.mxu0 %v3031_v16  ;;  %3162 = vmatprep.subr.bf16.mxu1 %v3161_v17  ;;  %v800_v16 = vld [vmem:[#allocation5 + $0x17c8] sm:$0xff]  ;;  %v807_v17 = vld [vmem:[#allocation5 + $0x1800] sm:$0xff]  ;;  %v3181_v21 = vpack.c.bf16 %v696_v14, %v689_v13 }
 0x1ad   :  { %3034 = vmatprep.subr.bf16.mxu0 %v3033_v23  ;;  %2032 = vmatprep.mubr.f32.mxu1 %v3395_v41  ;;  %v779_v41 = vld [vmem:[#allocation5 + $0x1720] sm:$0xff]  ;;  %v3053_v26 = vpack.c.bf16 %v807_v17, %v800_v16  ;;  %v745_v16 = vld [vmem:[#allocation5 + $0x1610] sm:$0xff]  ;;  %v752_v17 = vld [vmem:[#allocation5 + $0x1648] sm:$0xff] }
 0x1ae   :  { %1821 = vmatprep.mubr.f32.mxu0 %v3407_v7  ;;  %v3045_v24 = vpack.c.bf16 %v779_v41, %v772_v55  ;;  %v799_v23 = vld [vmem:[#allocation5 + $0x17c0] sm:$0xff]  ;;  %v717_v55 = vld [vmem:[#allocation5 + $0x1530] sm:$0xff]  ;;  %v724_v41 = vld [vmem:[#allocation5 + $0x1568] sm:$0xff] }
 0x1af   :  { %3164 = vmatpush3.bf16.msra.mxu1 %v3163_v32  ;;  %v710_v32 = vld [vmem:[#allocation5 + $0x14f8] sm:$0xff]  ;;  %v3055_v40 = vpack.c.bf16 %v806_v28, %v799_v23  ;;  %v855_v14 = vld [vmem:[#allocation5 + $0x1980] sm:$0xff]  ;;  %v869_v28 = vld [vmem:[#allocation5 + $0x19f0] sm:$0xff] }
 0x1b0   :  { %3036 = vmatpush1.bf16.msra.mxu0 %v3035_v33  ;;  %3166 = vmatprep.subr.bf16.mxu1 %v3165_v34  ;;  %v814_v34 = vld [vmem:[#allocation5 + $0x1838] sm:$0xff]  ;;  %v3185_v42 = vpack.c.bf16 %v710_v32, %v703_v29  ;;  %v759_v29 = vld [vmem:[#allocation5 + $0x1680] sm:$0xff] }
 0x1b1   :  { %3038 = vmatprep.subr.bf16.mxu0 %v3037_v38  ;;  %v3183_v38 = vpack.c.bf16 %v584_v25, %v577_v22  ;;  %v878_v23 = vld [vmem:[#allocation5 + $0x1a38] sm:$0xff]  ;;  %v3199_v25 = vpack.c.bf16 %v752_v17, %v745_v16  ;;  %v815_v17 = vld [vmem:[#allocation5 + $0x1840] sm:$0xff] }
 0x1b2   :  { %v870_v22 = vld [vmem:[#allocation5 + $0x19f8] sm:$0xff] }
 0x1b3   :  { %3168 = vmatpush3.bf16.msra.mxu1 %v3167_v44  ;;  %v598_v44 = vld [vmem:[#allocation5 + $0x1178] sm:$0xff] }
 0x1b4   :  { %3040 = vmatpush1.bf16.msra.mxu0 %v3039_v45  ;;  %3170 = vmatprep.subr.bf16.mxu1 %v3169_v47  ;;  %v3057_v45 = vpack.c.bf16 %v821_v35, %v814_v34  ;;  %v820_v47 = vld [vmem:[#allocation5 + $0x1868] sm:$0xff]  ;;  %v766_v32 = vld [vmem:[#allocation5 + $0x16b8] sm:$0xff]  ;;  %v885_v35 = vld [vmem:[#allocation5 + $0x1a70] sm:$0xff] }
 0x1b5   :  { %3042 = vmatprep.subr.bf16.mxu0 %v3041_v51  ;;  %v835_v51 = vld [vmem:[#allocation5 + $0x18e0] sm:$0xff]  ;;  %v3059_v52 = vpack.c.bf16 %v820_v47, %v813_v30  ;;  %v876_v34 = vld [vmem:[#allocation5 + $0x1a28] sm:$0xff] }
 0x1b6   :  { %v3075_v30 = vpack.c.bf16 %v876_v34, %v869_v28  ;;  %v780_v47 = vld [vmem:[#allocation5 + $0x1728] sm:$0xff] }
 0x1b7   :  { %3172 = vmatpush3.bf16.msra.mxu1 %v3171_v56  ;;  %v3061_v56 = vpack.c.bf16 %v835_v51, %v828_v50  ;;  %v899_v50 = vld [vmem:[#allocation5 + $0x1ae0] sm:$0xff]  ;;  %v906_v51 = vld [vmem:[#allocation5 + $0x1b18] sm:$0xff] }
 0x1b8   :  { %3044 = vmatpush1.bf16.msra.mxu0 %v3043_v57  ;;  %3174 = vmatprep.subr.bf16.mxu1 %v3173_v58  ;;  %v834_v57 = vld [vmem:[#allocation5 + $0x18d8] sm:$0xff]  ;;  %v843_v58 = vld [vmem:[#allocation5 + $0x1920] sm:$0xff] }
 0x1b9   :  { %3046 = vmatprep.subr.bf16.mxu0 %v3045_v24  ;;  %v3191_v24 = vpack.c.bf16 %v724_v41, %v717_v55  ;;  %v3063_v63 = vpack.c.bf16 %v834_v57, %v827_v54  ;;  %v3193_v0 = vpack.c.bf16 %v850_v27, %v843_v58  ;;  %v3209_v55 = vpack.c.bf16 %v906_v51, %v899_v50  ;;  %v897_v41 = vld [vmem:[#allocation5 + $0x1ad0] sm:$0xff]  ;;  %v794_v57 = vld [vmem:[#allocation5 + $0x1798] sm:$0xff]  ;;  %v904_v27 = vld [vmem:[#allocation5 + $0x1b08] sm:$0xff] }
 0x1bb   :  { %3176 = vmatpush3.bf16.msra.mxu1 %v3175_v4  ;;  %v3065_v4 = vpack.c.bf16 %v849_v62, %v842_v61  ;;  %v913_v61 = vld [vmem:[#allocation5 + $0x1b50] sm:$0xff]  ;;  %v920_v62 = vld [vmem:[#allocation5 + $0x1b88] sm:$0xff] }
 0x1bc   :  { %3048 = vmatpush1.bf16.msra.mxu0 %v3047_v5  ;;  %3178 = vmatprep.subr.bf16.mxu1 %v3177_v6  ;;  %v848_v5 = vld [vmem:[#allocation5 + $0x1948] sm:$0xff]  ;;  %v857_v6 = vld [vmem:[#allocation5 + $0x1990] sm:$0xff] }
 0x1bd   :  { %3050 = vmatprep.subr.bf16.mxu0 %v3049_v11  ;;  %v3195_v11 = vpack.c.bf16 %v738_v3, %v731_v2  ;;  %v3067_v12 = vpack.c.bf16 %v848_v5, %v841_v1  ;;  %v3197_v13 = vpack.c.bf16 %v864_v8, %v857_v6  ;;  %v3083_v1 = vpack.c.bf16 %v904_v27, %v897_v41  ;;  %v911_v3 = vld [vmem:[#allocation5 + $0x1b40] sm:$0xff]  ;;  %v808_v5 = vld [vmem:[#allocation5 + $0x1808] sm:$0xff]  ;;  %v918_v8 = vld [vmem:[#allocation5 + $0x1b78] sm:$0xff] }
 0x1be   :  { %v1255_v33 = vpop.f32.mrb[0].mxu0  ;;  %v3213_v2 = vpack.c.bf16 %v920_v62, %v913_v61 }
 0x1bf   :  { %v3439_v36 = vadd.f32 %v1255_v33, %v3424_v15  ;;  %v1257_v37 = vpop.f32.mrb[1].mxu0  ;;  %3180 = vmatpush3.bf16.msra.mxu1 %v3179_v20  ;;  %v3069_v20 = vpack.c.bf16 %v863_v10, %v856_v9  ;;  %v927_v9 = vld [vmem:[#allocation5 + $0x1bc0] sm:$0xff]  ;;  %v934_v10 = vld [vmem:[#allocation5 + $0x1bf8] sm:$0xff] }
 0x1c0   :  { %v3442_v39 = vadd.f32 %v1257_v37, %v3426_v19  ;;  %3052 = vmatpush1.bf16.msra.mxu0 %v3051_v18  ;;  %3182 = vmatprep.subr.bf16.mxu1 %v3181_v21  ;;  %v3187_v19 = vpack.c.bf16 %v598_v44, %v591_v43  ;;  %v862_v18 = vld [vmem:[#allocation5 + $0x19b8] sm:$0xff]  ;;  %v871_v21 = vld [vmem:[#allocation5 + $0x1a00] sm:$0xff]  ;;  %v892_v37 = vld [vmem:[#allocation5 + $0x1aa8] sm:$0xff]  ;;  %v3217_v16 = vpack.c.bf16 %v934_v10, %v927_v9 }
 0x1c1   :  { %3054 = vmatprep.subr.bf16.mxu0 %v3053_v26  ;;  %v3071_v26 = vpack.c.bf16 %v862_v18, %v855_v14  ;;  %v3205_v43 = vpack.c.bf16 %v892_v37, %v885_v35  ;;  %v883_v44 = vld [vmem:[#allocation5 + $0x1a60] sm:$0xff]  ;;  %v3087_v14 = vpack.c.bf16 %v918_v8, %v911_v3 }
 0x1c2   :  { %v2115_v15 = vcombine.low %v3439_v36, %v3442_v39  ;;  %v3079_v54 = vpack.c.bf16 %v890_v49, %v883_v44 }
 0x1c3   :  { %3184 = vmatpush3.bf16.msra.mxu1 %v3183_v38  ;;  %v884_v38 = vld [vmem:[#allocation5 + $0x1a68] sm:$0xff] }
 0x1c4   :  { %3056 = vmatpush1.bf16.msra.mxu0 %v3055_v40  ;;  %3186 = vmatprep.subr.bf16.mxu1 %v3185_v42  ;;  %v891_v40 = vld [vmem:[#allocation5 + $0x1aa0] sm:$0xff]  ;;  %v3203_v42 = vpack.c.bf16 %v766_v32, %v759_v29 }
 0x1c5   :  { %3058 = vmatprep.subr.bf16.mxu0 %v3057_v45  ;;  %v773_v45 = vld [vmem:[#allocation5 + $0x16f0] sm:$0xff]  ;;  %v3077_v48 = vpack.c.bf16 %v891_v40, %v884_v38 }
 0x1c7   :  { %3188 = vmatpush3.bf16.msra.mxu1 %v3187_v19  ;;  %v898_v19 = vld [vmem:[#allocation5 + $0x1ad8] sm:$0xff] }
 0x1c8   :  { %3060 = vmatpush1.bf16.msra.mxu0 %v3059_v52  ;;  %3190 = vmatprep.subr.bf16.mxu1 %v3189_v53  ;;  %v905_v52 = vld [vmem:[#allocation5 + $0x1b10] sm:$0xff]  ;;  %v3207_v53 = vpack.c.bf16 %v780_v47, %v773_v45 }
 0x1c9   :  { %3062 = vmatprep.subr.bf16.mxu0 %v3061_v56  ;;  %v787_v56 = vld [vmem:[#allocation5 + $0x1760] sm:$0xff]  ;;  %v3081_v58 = vpack.c.bf16 %v905_v52, %v898_v19 }
 0x1ca   :  { %2033 = vmatmul.mubr.f32.vlgmr.msra.gmra.mrb[8].mxu1 %v3404_v60  ;;  %v877_v60 = vld [vmem:[#allocation5 + $0x1a30] sm:$0xff] }
 0x1cb   :  { %3192 = vmatpush3.bf16.msra.mxu1 %v3191_v24  ;;  %2102 = vmatprep.mubr.f32.mxu1 %v3407_v7  ;;  %v3201_v7 = vpack.c.bf16 %v878_v23, %v871_v21  ;;  %v3073_v33 = vpack.c.bf16 %v877_v60, %v870_v22  ;;  %v912_v24 = vld [vmem:[#allocation5 + $0x1b48] sm:$0xff]  ;;  %v925_v21 = vld [vmem:[#allocation5 + $0x1bb0] sm:$0xff] }
 0x1cc   :  { %3064 = vmatpush1.bf16.msra.mxu0 %v3063_v63  ;;  %3194 = vmatprep.subr.bf16.mxu1 %v3193_v0  ;;  %v919_v63 = vld [vmem:[#allocation5 + $0x1b80] sm:$0xff]  ;;  %v3211_v0 = vpack.c.bf16 %v794_v57, %v787_v56  ;;  %v932_v23 = vld [vmem:[#allocation5 + $0x1be8] sm:$0xff] }
 0x1cd   :  { %3066 = vmatprep.subr.bf16.mxu0 %v3065_v4  ;;  %v801_v4 = vld [vmem:[#allocation5 + $0x17d0] sm:$0xff]  ;;  %v3085_v6 = vpack.c.bf16 %v919_v63, %v912_v24  ;;  %v3091_v60 = vpack.c.bf16 %v932_v23, %v925_v21 }
 0x1cf   :  { %3196 = vmatpush3.bf16.msra.mxu1 %v3195_v11  ;;  %v926_v11 = vld [vmem:[#allocation5 + $0x1bb8] sm:$0xff] }
 0x1d0   :  { %3068 = vmatpush1.bf16.msra.mxu0 %v3067_v12  ;;  %3198 = vmatprep.subr.bf16.mxu1 %v3197_v13  ;;  %v933_v12 = vld [vmem:[#allocation5 + $0x1bf0] sm:$0xff]  ;;  %v3215_v13 = vpack.c.bf16 %v808_v5, %v801_v4 }
 0x1d1   :  { %3070 = vmatprep.subr.bf16.mxu0 %v3069_v20  ;;  %v822_v20 = vld [vmem:[#allocation5 + $0x1878] sm:$0xff]  ;;  %v3089_v18 = vpack.c.bf16 %v933_v12, %v926_v11 }
 0x1d2   :  { %v3219_v22 = vpack.c.bf16 %v822_v20, %v815_v17 }
 0x1d3   :  { %3200 = vmatpush3.bf16.msra.mxu1 %v3199_v25  ;;  %v3322_v25 = vmov 1966171168  }
 0x1d4   :  { %3072 = vmatpush1.bf16.msra.mxu0 %v3071_v26  ;;  %3202 = vmatprep.subr.bf16.mxu1 %v3201_v7  ;;  %v2119_v26 = vunpack.c.l.s4 %v3322_v25 }
 0x1d5   :  { %3074 = vmatprep.subr.bf16.mxu0 %v3073_v33 }
 0x1d6   :  { %v2120_v7 = vunpack.c.0.s8 %v2119_v26 }
 0x1d7   :  { %3204 = vmatpush3.bf16.msra.mxu1 %v3203_v42 }
 0x1d8   :  { %3076 = vmatpush1.bf16.msra.mxu0 %v3075_v30  ;;  %3206 = vmatprep.subr.bf16.mxu1 %v3205_v43  ;;  %v2123_v28 = vsub.s32 %v2120_v7, %v3371_v59 }
 0x1d9   :  { %3078 = vmatprep.subr.bf16.mxu0 %v3077_v48 }
 0x1da   :  { %v2124_v34 = vrot.slane %v2115_v15, %v2123_v28 }
 0x1db   :  { %3208 = vmatpush3.bf16.msra.mxu1 %v3207_v53 }
 0x1dc   :  { %3080 = vmatpush1.bf16.msra.mxu0 %v3079_v54  ;;  %3210 = vmatprep.subr.bf16.mxu1 %v3209_v55 }
 0x1dd   :  { %3082 = vmatprep.subr.bf16.mxu0 %v3081_v58 }
 0x1df   :  { %3212 = vmatpush3.bf16.msra.mxu1 %v3211_v0 }
 0x1e0   :  { %3084 = vmatpush1.bf16.msra.mxu0 %v3083_v1  ;;  %3214 = vmatprep.subr.bf16.mxu1 %v3213_v2 }
 0x1e1   :  { %3086 = vmatprep.subr.bf16.mxu0 %v3085_v6 }
 0x1e3   :  { %3216 = vmatpush3.bf16.msra.mxu1 %v3215_v13 }
 0x1e4   :  { %3088 = vmatpush1.bf16.msra.mxu0 %v3087_v14  ;;  %3218 = vmatprep.subr.bf16.mxu1 %v3217_v16 }
 0x1e5   :  { %3090 = vmatprep.subr.bf16.mxu0 %v3089_v18 }
 0x1e7   :  { %3220 = vmatpush3.bf16.msra.mxu1 %v3219_v22 }
 0x1e8   :  { %3092 = vmatpush1.bf16.msra.mxu0 %v3091_v60 }
 0x1ea   :  { %2103 = vmatmul.mubr.f32.vlgmr.msra.gmra.mrb[10].mxu1 %v3414_v31 }
 0x1eb   :  { %1822 = vmatmul.mubr.f32.vlgmr.msra.gmra.mrb[2].mxu0 %v3414_v31 }
 0x23d   :  { %v1539_v29 = vpop.f32.mrb[2].mxu1 }
 0x23e   :  { %v1541_v32 = vpop.f32.mrb[3].mxu1 }
 0x23f   :  { %v2116_v33 = vcombine.low %v1539_v29, %v1541_v32 }
 0x241   :  { %v2131_v35 = vrot.slane %v2116_v33, %v2123_v28 }
 0x243   :  { %v2146_v37 = vcombine.low %v2124_v34, %v2131_v35 }
 0x245   :  { %v2154_v55 = vrot.slane %v2146_v37, %v2123_v28 }
 0x25d   :  { %v2217_v38 = vpop.f32.mrb[4].mxu1 }
 0x25e   :  { %v2218_v40 = vpop.f32.mrb[5].mxu1 }
 0x25f   :  { %v2219_v42 = vadd.f32 %v2218_v40, %v2217_v38 }
 0x27d   :  { %v2252_v30 = vpop.f32.mrb[6].mxu1 }
 0x27e   :  { %v2253_v43 = vpop.f32.mrb[7].mxu1 }
 0x27f   :  { %v2254_v31 = vadd.f32 %v2253_v43, %v2252_v30 }
 0x281   :  { %v1965_v44 = vadd.f32 %v2254_v31, %v2219_v42 }
 0x29d   :  { %v2287_v45 = vpop.f32.mrb[8].mxu1 }
 0x29e   :  { %v2288_v47 = vpop.f32.mrb[9].mxu1 }
 0x29f   :  { %v2289_v48 = vadd.f32 %v2288_v47, %v2287_v45 }
 0x2a1   :  { %v2035_v59 = vadd.f32 %v2289_v48, %v1965_v44 }
 0x2bd   :  { %v2322_v49 = vpop.f32.mrb[10].mxu1 }
 0x2be   :  { %v1823_v50 = vpop.f32.mrb[2].mxu0  ;;  %v2323_v51 = vpop.f32.mrb[11].mxu1 }
 0x2bf   :  { %v1825_v19 = vpop.f32.mrb[3].mxu0  ;;  %v2324_v52 = vadd.f32 %v2323_v51, %v2322_v49 }
 0x2c0   :  { %v2117_v36 = vcombine.low %v1823_v50, %v1825_v19 }
 0x2c1   :  { %v2105_v39 = vadd.f32 %v2324_v52, %v2035_v59 }
 0x2c2   :  { %v2138_v15 = vrot.slane %v2117_v36, %v2123_v28 }
 0x2c3   :  { %v2145_v53 = vrot.slane %v2105_v39, %v2123_v28 }
 0x2c5   :  { %v2147_v54 = vcombine.low %v2138_v15, %v2145_v53 }
 0x2c7   :  { %v2161_v41 = vrot.slane %v2147_v54, %v2123_v28 }
 0x2c9   :  { %v2162_v56 = vcombine.low %v2154_v55, %v2161_v41 }
 0x2cb   :  { %2168 = vst.msk [vmem:[#allocation7] sm:$0x7f] %vm2166_vm0, %v2162_v56 }
 0x2cc   :  { %3301 = shalt.err (!%p3298_p6)
}
 0x2cd   :  { %s3302_s11 = scalar_lea.hbm %s3469_s2, 112 }
 0x2ce   :  { %p3303_p7 = scmp.ne.s32.totalorder %s3469_s2, %s3302_s11  ;;  %p3306_p8 = scmp.lt.u32.totalorder %s3302_s11, %s3469_s2 }
 0x2d0   :  { %p3308_p9 = pnand %p3306_p8, %p3303_p7 }
 0x2d2   :  { %3311 = shalt.err (!%p3308_p9)
}
 0x2d3   :  { %2178 = dma.vmem_to_hbm [thread:$0]  %s2176_s6, 112, %s3469_s2, [#allocation4]  }
 0x2d4   :  { %3316 = dma.done.wait [#allocation4], 112  }
 0x2d5   :  { %3317 = vsyncadd [#allocation4], 4294967184 }
 0x2d6   :  { %2182 = vsyncpa [#allocation3], 1 }
 0x2d7   :  { %2183 = vsyncpa [#allocation6], 1 }
 0x2d8   :  { %2184 = vsyncpa [#allocation4], 1 }

</bundles_post_ra>
